<compile_context>
chip_gen: v5e
topology: v5e:2x2
jax: 0.10.0
libtpu: 0.0.40
codegen_flags: <defaults>
</compile_context>

<pallas_src>
import functools
import math

import jax
import jax.numpy as jnp
from jax import lax
from jax.experimental import pallas as pl
from jax.experimental.pallas import tpu as pltpu

_LANES = 128


def _layer_norm(x, w, b, eps=1e-5):
    mean = jnp.mean(x, axis=-1, keepdims=True)
    var = jnp.mean((x - mean) ** 2, axis=-1, keepdims=True)
    return (x - mean) * lax.rsqrt(var + eps) * w + b


def _decoder_layer_kernel(
    B, L_t, L_s, D, PF, n_heads, head_dim,
    # ---------------- inputs (whole arrays in VMEM) ----------------
    trg_ref, enc_ref, tbias_ref, sbias_ref,
    w_ref,      # (6, D, 128): sa_qkv | sa_o | ca_q | ca_kv | ca_o | ff1
    wff2_ref,   # (PF, D)
    vec_ref,    # (16, 128): biases + LN params, one per row
    # ---------------- outputs ----------------
    out_ref,    # (B*L_t, D)
    attn_ref,   # (L_t, B*H*L_s) lane-dense
):
    f32 = jnp.float32
    inv_scale = 1.0 / math.sqrt(head_dim)

    vec = vec_ref[...]

    def vrow(i, width):
        return vec[i:i + 1, :width]           # (1, width) static slice

    def softmax_attn(qh, kh, bias):
        # qh @ kh^T without materializing a transpose.
        energy = lax.dot_general(
            qh, kh, (((1,), (1,)), ((), ())),
            preferred_element_type=f32) * inv_scale + bias
        energy = energy - jnp.max(energy, axis=-1, keepdims=True)
        p = jnp.exp(energy)
        return p * pl.reciprocal(jnp.sum(p, axis=-1, keepdims=True),
                                 approx=True)

    trg = trg_ref[...]            # (B*L_t, D) folded batch
    enc = enc_ref[...]            # (B*L_s, D) folded batch

    # --------------------- self-attention + LN1 -----------------------------
    w_qkv = w_ref[0][:, :3 * D]
    qkv = jnp.dot(trg, w_qkv, preferred_element_type=f32) + vrow(0, 3 * D)
    w_o = w_ref[1][:, :D]
    b_o = vrow(1, D)
    tbias = tbias_ref[...]        # (B*L_t, L_t) additive mask bias

    sa_rows = []
    for b in range(B):
        r0 = b * L_t
        q_b = qkv[r0:r0 + L_t, 0:D]
        k_b = qkv[r0:r0 + L_t, D:2 * D]
        v_b = qkv[r0:r0 + L_t, 2 * D:3 * D]
        bias_b = tbias[r0:r0 + L_t, :]
        acc = jnp.zeros((L_t, D), f32)
        for h in range(n_heads):
            c0 = h * head_dim
            attn = softmax_attn(q_b[:, c0:c0 + head_dim],
                                k_b[:, c0:c0 + head_dim], bias_b)
            ctx = jnp.dot(attn, v_b[:, c0:c0 + head_dim],
                          preferred_element_type=f32)
            acc = acc + jnp.dot(ctx, w_o[c0:c0 + head_dim, :],
                                preferred_element_type=f32)
        sa_rows.append(acc + b_o)
    sa = jnp.concatenate(sa_rows, axis=0)
    trg = _layer_norm(trg + sa, vrow(2, D), vrow(3, D))

    # -------------------- cross-attention + LN2 -----------------------------
    w_q = w_ref[2][:, :D]
    w_kv = w_ref[3][:, :2 * D]
    w_o2 = w_ref[4][:, :D]
    b_o2 = vrow(6, D)
    q = jnp.dot(trg, w_q, preferred_element_type=f32) + vrow(4, D)
    kv = jnp.dot(enc, w_kv, preferred_element_type=f32) + vrow(5, 2 * D)
    sbias = sbias_ref[...]        # (B, L_s) additive mask bias

    ca_rows = []
    attn_cols = []
    for b in range(B):
        r0, s0 = b * L_t, b * L_s
        q_b = q[r0:r0 + L_t, :]
        k_b = kv[s0:s0 + L_s, 0:D]
        v_b = kv[s0:s0 + L_s, D:2 * D]
        bias_b = sbias[b:b + 1, :]
        acc = jnp.zeros((L_t, D), f32)
        for h in range(n_heads):
            c0 = h * head_dim
            attn = softmax_attn(q_b[:, c0:c0 + head_dim],
                                k_b[:, c0:c0 + head_dim], bias_b)
            attn_cols.append(attn)
            ctx = jnp.dot(attn, v_b[:, c0:c0 + head_dim],
                          preferred_element_type=f32)
            acc = acc + jnp.dot(ctx, w_o2[c0:c0 + head_dim, :],
                                preferred_element_type=f32)
        ca_rows.append(acc + b_o2)
    ca = jnp.concatenate(ca_rows, axis=0)
    # Single lane-dense (L_t, B*H*L_s) store instead of 8 masked 16-lane ones.
    attn_ref[...] = jnp.concatenate(attn_cols, axis=1)
    trg = _layer_norm(trg + ca, vrow(7, D), vrow(8, D))

    # --------------------- feed-forward + LN3 -------------------------------
    w1 = w_ref[5][:, :PF]
    hidden = jnp.maximum(
        jnp.dot(trg, w1, preferred_element_type=f32) + vrow(9, PF), 0.0)
    ff = jnp.dot(hidden, wff2_ref[...], preferred_element_type=f32) + vrow(10, D)
    trg = _layer_norm(trg + ff, vrow(11, D), vrow(12, D))

    out_ref[...] = trg.astype(out_ref.dtype)


def pack_params(params):
    """One-time packing of the 26 DecoderLayer tensors into 3 VMEM slabs."""
    def w_t(name):
        # nn.Linear stores (out, in); transpose so the kernel computes x @ W.
        return params[name].T.astype(jnp.float32)

    D = params["sa_q_w"].shape[0]
    PF = params["ff_1_w"].shape[0]
    assert 3 * D <= _LANES and PF <= _LANES, "packing assumes 3*D,PF <= 128"

    def pad_cols(a):
        return jnp.pad(a, ((0, 0), (0, _LANES - a.shape[1])))

    segs = [
        jnp.concatenate([w_t("sa_q_w"), w_t("sa_k_w"), w_t("sa_v_w")], axis=1),
        w_t("sa_o_w"),
        w_t("ca_q_w"),
        jnp.concatenate([w_t("ca_k_w"), w_t("ca_v_w")], axis=1),
        w_t("ca_o_w"),
        w_t("ff_1_w"),
    ]
    w_slab = jnp.stack([pad_cols(s) for s in segs], axis=0)      # (6, D, 128)
    w_ff2 = w_t("ff_2_w")                                        # (PF, D)

    def vrow(*names):
        v = jnp.concatenate(
            [params[n].reshape(-1).astype(jnp.float32) for n in names])
        return jnp.pad(v, (0, _LANES - v.shape[0]))

    rows = [
        vrow("sa_q_b", "sa_k_b", "sa_v_b"), vrow("sa_o_b"),
        vrow("ln1_w"), vrow("ln1_b"),
        vrow("ca_q_b"), vrow("ca_k_b", "ca_v_b"), vrow("ca_o_b"),
        vrow("ln2_w"), vrow("ln2_b"),
        vrow("ff_1_b"), vrow("ff_2_b"),
        vrow("ln3_w"), vrow("ln3_b"),
    ]
    n_rows = -(-len(rows) // 8) * 8
    vec_slab = jnp.pad(jnp.stack(rows, axis=0),
                       ((0, n_rows - len(rows)), (0, 0)))        # (16, 128)
    return w_slab, w_ff2, vec_slab


def decoder_layer(trg, enc_src, trg_mask, src_mask, packed, *, n_heads):
    """Fused DecoderLayer forward (eval mode). Returns (trg_out, cross_attn)."""
    w_slab, w_ff2, vec_slab = packed
    B, L_t, D = trg.shape
    _, L_s, _ = enc_src.shape
    assert D % n_heads == 0
    head_dim = D // n_heads
    PF = w_ff2.shape[0]

    # Fold batch into the row (sublane) dim; position-wise ops run on one slab.
    trg_f = trg.reshape(B * L_t, D).astype(jnp.float32)
    enc_f = enc_src.reshape(B * L_s, D).astype(jnp.float32)
    # Additive mask biases, computed once (mask shapes: (B,1,L_t,L_t), (B,1,1,L_s)).
    tbias = jnp.where(trg_mask.reshape(B * L_t, L_t) == 0, -1e10, 0.0
                      ).astype(jnp.float32)
    sbias = jnp.where(src_mask.reshape(B, L_s) == 0, -1e10, 0.0
                      ).astype(jnp.float32)

    kernel = functools.partial(_decoder_layer_kernel,
                               B, L_t, L_s, D, PF, n_heads, head_dim)

    out, attn_flat = pl.pallas_call(
        kernel,
        out_shape=(jax.ShapeDtypeStruct((B * L_t, D), trg.dtype),
                   jax.ShapeDtypeStruct((L_t, B * n_heads * L_s), jnp.float32)),
        in_specs=[pl.BlockSpec(memory_space=pltpu.MemorySpace.VMEM)
                  for _ in range(7)],
        out_specs=(pl.BlockSpec(memory_space=pltpu.MemorySpace.VMEM),
                   pl.BlockSpec(memory_space=pltpu.MemorySpace.VMEM)),
    )(trg_f, enc_f, tbias, sbias, w_slab, w_ff2, vec_slab)

    attn = attn_flat.reshape(L_t, B, n_heads, L_s).transpose(1, 2, 0, 3)
    return out.reshape(B, L_t, D), attn


if __name__ == "__main__":
    B, L_t, L_s, D, H, PF = 2, 8, 16, 32, 4, 64

    key = jax.random.PRNGKey(0)
    keys = list(jax.random.split(key, 16))
    k_iter = iter(keys)

    def lin(k, out_f, in_f, scale=0.1):
        kw, kb = jax.random.split(k)
        return (jax.random.normal(kw, (out_f, in_f), jnp.float32) * scale,
                jax.random.normal(kb, (out_f,), jnp.float32) * scale)

    params = {}
    for pre in ("sa", "ca"):
        for name in ("q", "k", "v", "o"):
            w, b = lin(next(k_iter), D, D)
            params[f"{pre}_{name}_w"] = w
            params[f"{pre}_{name}_b"] = b
    w, b = lin(next(k_iter), PF, D)
    params["ff_1_w"], params["ff_1_b"] = w, b
    w, b = lin(next(k_iter), D, PF)
    params["ff_2_w"], params["ff_2_b"] = w, b
    for i in (1, 2, 3):
        params[f"ln{i}_w"] = jnp.ones((D,), jnp.float32)
        params[f"ln{i}_b"] = jnp.zeros((D,), jnp.float32)

    trg = jax.random.normal(next(k_iter), (B, L_t, D), jnp.float32)
    enc_src = jax.random.normal(next(k_iter), (B, L_s, D), jnp.float32)

    # causal target mask + padded source mask (standard shapes)
    causal = jnp.tril(jnp.ones((L_t, L_t), jnp.float32))
    trg_mask = jnp.broadcast_to(causal, (B, 1, L_t, L_t))
    src_mask = jnp.ones((B, 1, 1, L_s), jnp.float32)
    src_mask = src_mask.at[:, :, :, L_s - 3:].set(0.0)

    packed = pack_params(params)     # one-time weight packing (outside jit)
    run = jax.jit(functools.partial(decoder_layer, n_heads=H))
    out, attn = run(trg, enc_src, trg_mask, src_mask, packed)
    out = jax.block_until_ready(out)
    attn = jax.block_until_ready(attn)

    # ---------------- pure-JAX reference (same math, XLA ops) ----------------
    def ref_mha(q_in, k_in, v_in, mask, pre):
        def linear(x, n):
            return x @ params[f"{pre}_{n}_w"].T + params[f"{pre}_{n}_b"]
        hd = D // H
        def split(x):
            return x.reshape(B, -1, H, hd).transpose(0, 2, 1, 3)
        Q, K, V = split(linear(q_in, "q")), split(linear(k_in, "k")), split(linear(v_in, "v"))
        energy = jnp.einsum("bhqd,bhkd->bhqk", Q, K) / math.sqrt(hd)
        energy = jnp.where(mask == 0.0, -1e10, energy)
        attention = jax.nn.softmax(energy, axis=-1)
        x = jnp.einsum("bhqk,bhkd->bhqd", attention, V)
        x = x.transpose(0, 2, 1, 3).reshape(B, -1, D)
        return x @ params[f"{pre}_o_w"].T + params[f"{pre}_o_b"], attention

    def ref_ln(x, w_, b_, eps=1e-5):
        mu = x.mean(-1, keepdims=True)
        var = ((x - mu) ** 2).mean(-1, keepdims=True)
        return (x - mu) / jnp.sqrt(var + eps) * w_ + b_

    sa, _ = ref_mha(trg, trg, trg, trg_mask, "sa")
    t1 = ref_ln(trg + sa, params["ln1_w"], params["ln1_b"])
    ca, ref_attn = ref_mha(t1, enc_src, enc_src, src_mask, "ca")
    t2 = ref_ln(t1 + ca, params["ln2_w"], params["ln2_b"])
    hidden = jax.nn.relu(t2 @ params["ff_1_w"].T + params["ff_1_b"])
    ff = hidden @ params["ff_2_w"].T + params["ff_2_b"]
    ref_out = ref_ln(t2 + ff, params["ln3_w"], params["ln3_b"])

    assert out.shape == (B, L_t, D)
    assert attn.shape == (B, H, L_t, L_s)
    assert bool(jnp.all(jnp.isfinite(out)))
    max_err = float(jnp.max(jnp.abs(out - ref_out)))
    max_err_a = float(jnp.max(jnp.abs(attn - ref_attn)))
    # Loose tolerance: MXU default f32 matmul precision and the approximate
    # EUP reciprocal may differ slightly from the XLA reference.
    assert max_err < 2e-2 and max_err_a < 2e-2, (max_err, max_err_a)

    print("KERNEL_OK")
</pallas_src>

<mosaic_0001>
module attributes {stable_mosaic.version = 11 : i64} {
  func.func @_decoder_layer_kernel(%arg0: memref<16x32xf32, #tpu.memory_space<vmem>>, %arg1: memref<32x32xf32, #tpu.memory_space<vmem>>, %arg2: memref<16x8xf32, #tpu.memory_space<vmem>>, %arg3: memref<2x16xf32, #tpu.memory_space<vmem>>, %arg4: memref<6x32x128xf32, #tpu.memory_space<vmem>>, %arg5: memref<64x32xf32, #tpu.memory_space<vmem>>, %arg6: memref<16x128xf32, #tpu.memory_space<vmem>>, %arg7: memref<16x32xf32, #tpu.memory_space<vmem>>, %arg8: memref<8x128xf32, #tpu.memory_space<vmem>>) attributes {dimension_semantics = [], scalar_prefetch = 0 : i64, scratch_operands = 0 : i64, tpu.core_type = #tpu.core_type<tc>} {
    %c0 = arith.constant 0 : index
    %c0_0 = arith.constant 0 : index
    %0 = vector.load %arg6[%c0, %c0_0] : memref<16x128xf32, #tpu.memory_space<vmem>>, vector<16x128xf32>
    %c0_1 = arith.constant 0 : index
    %c0_2 = arith.constant 0 : index
    %1 = vector.load %arg0[%c0_1, %c0_2] : memref<16x32xf32, #tpu.memory_space<vmem>>, vector<16x32xf32>
    %c0_3 = arith.constant 0 : index
    %c0_4 = arith.constant 0 : index
    %2 = vector.load %arg1[%c0_3, %c0_4] : memref<32x32xf32, #tpu.memory_space<vmem>>, vector<32x32xf32>
    %c0_5 = arith.constant 0 : index
    %c0_6 = arith.constant 0 : index
    %c0_7 = arith.constant 0 : index
    %3 = vector.load %arg4[%c0_5, %c0_6, %c0_7] : memref<6x32x128xf32, #tpu.memory_space<vmem>>, vector<1x32x128xf32>
    %4 = vector.shape_cast %3 : vector<1x32x128xf32> to vector<32x128xf32>
    %5 = vector.extract_strided_slice %4 {offsets = [0, 0], sizes = [32, 96], strides = [1, 1]} : vector<32x128xf32> to vector<32x96xf32>
    %cst = arith.constant dense<0.000000e+00> : vector<16x96xf32>
    %6 = tpu.matmul %1, %5, %cst {dimension_numbers = #tpu.dot_dimension_numbers<[1], [0], [0], [1], [0, 0, 1, 1], [], []>} : vector<16x32xf32>, vector<32x96xf32>, vector<16x96xf32> -> vector<16x96xf32>
    %7 = vector.extract_strided_slice %0 {offsets = [0, 0], sizes = [1, 96], strides = [1, 1]} : vector<16x128xf32> to vector<1x96xf32>
    %8 = vector.broadcast %7 : vector<1x96xf32> to vector<16x96xf32>
    %9 = arith.addf %6, %8 : vector<16x96xf32>
    %c1 = arith.constant 1 : index
    %c0_8 = arith.constant 0 : index
    %c0_9 = arith.constant 0 : index
    %10 = vector.load %arg4[%c1, %c0_8, %c0_9] : memref<6x32x128xf32, #tpu.memory_space<vmem>>, vector<1x32x128xf32>
    %11 = vector.shape_cast %10 : vector<1x32x128xf32> to vector<32x128xf32>
    %12 = vector.extract_strided_slice %11 {offsets = [0, 0], sizes = [32, 32], strides = [1, 1]} : vector<32x128xf32> to vector<32x32xf32>
    %13 = vector.extract_strided_slice %0 {offsets = [1, 0], sizes = [1, 32], strides = [1, 1]} : vector<16x128xf32> to vector<1x32xf32>
    %c0_10 = arith.constant 0 : index
    %c0_11 = arith.constant 0 : index
    %14 = vector.load %arg2[%c0_10, %c0_11] : memref<16x8xf32, #tpu.memory_space<vmem>>, vector<16x8xf32>
    %15 = vector.extract_strided_slice %9 {offsets = [0, 0], sizes = [8, 32], strides = [1, 1]} : vector<16x96xf32> to vector<8x32xf32>
    %16 = vector.extract_strided_slice %9 {offsets = [0, 32], sizes = [8, 32], strides = [1, 1]} : vector<16x96xf32> to vector<8x32xf32>
    %17 = vector.extract_strided_slice %9 {offsets = [0, 64], sizes = [8, 32], strides = [1, 1]} : vector<16x96xf32> to vector<8x32xf32>
    %18 = vector.extract_strided_slice %14 {offsets = [0, 0], sizes = [8, 8], strides = [1, 1]} : vector<16x8xf32> to vector<8x8xf32>
    %cst_12 = arith.constant 0.000000e+00 : f32
    %19 = vector.broadcast %cst_12 : f32 to vector<8x32xf32>
    %20 = vector.extract_strided_slice %15 {offsets = [0, 0], sizes = [8, 8], strides = [1, 1]} : vector<8x32xf32> to vector<8x8xf32>
    %21 = vector.extract_strided_slice %16 {offsets = [0, 0], sizes = [8, 8], strides = [1, 1]} : vector<8x32xf32> to vector<8x8xf32>
    %cst_13 = arith.constant dense<0.000000e+00> : vector<8x8xf32>
    %22 = tpu.matmul %20, %21, %cst_13 {dimension_numbers = #tpu.dot_dimension_numbers<[1], [1], [0], [0], [0, 0, 1, 0], [], []>} : vector<8x8xf32>, vector<8x8xf32>, vector<8x8xf32> -> vector<8x8xf32>
    %cst_14 = arith.constant 0.353553385 : f32
    %23 = vector.broadcast %cst_14 : f32 to vector<8x8xf32>
    %24 = arith.mulf %22, %23 : vector<8x8xf32>
    %25 = arith.addf %24, %18 : vector<8x8xf32>
    %cst_15 = arith.constant dense<0xFF800000> : vector<8xf32>
    %26 = vector.multi_reduction <maximumf>, %25, %cst_15 [1] : vector<8x8xf32> to vector<8xf32>
    %27 = vector.shape_cast %26 : vector<8xf32> to vector<8x1xf32>
    %28 = vector.broadcast %27 : vector<8x1xf32> to vector<8x8xf32>
    %29 = arith.subf %25, %28 : vector<8x8xf32>
    %30 = math.exp %29 : vector<8x8xf32>
    %cst_16 = arith.constant dense<0.000000e+00> : vector<8xf32>
    %31 = vector.multi_reduction <add>, %30, %cst_16 [1] : vector<8x8xf32> to vector<8xf32>
    %32 = vector.shape_cast %31 : vector<8xf32> to vector<8x1xf32>
    %33 = tpu.reciprocal %32 {approx = true} : vector<8x1xf32> -> vector<8x1xf32>
    %34 = vector.broadcast %33 : vector<8x1xf32> to vector<8x8xf32>
    %35 = arith.mulf %30, %34 : vector<8x8xf32>
    %36 = vector.extract_strided_slice %17 {offsets = [0, 0], sizes = [8, 8], strides = [1, 1]} : vector<8x32xf32> to vector<8x8xf32>
    %cst_17 = arith.constant dense<0.000000e+00> : vector<8x8xf32>
    %37 = tpu.matmul %35, %36, %cst_17 {dimension_numbers = #tpu.dot_dimension_numbers<[1], [0], [0], [1], [0, 0, 1, 1], [], []>} : vector<8x8xf32>, vector<8x8xf32>, vector<8x8xf32> -> vector<8x8xf32>
    %38 = vector.extract_strided_slice %12 {offsets = [0, 0], sizes = [8, 32], strides = [1, 1]} : vector<32x32xf32> to vector<8x32xf32>
    %cst_18 = arith.constant dense<0.000000e+00> : vector<8x32xf32>
    %39 = tpu.matmul %37, %38, %cst_18 {dimension_numbers = #tpu.dot_dimension_numbers<[1], [0], [0], [1], [0, 0, 1, 1], [], []>} : vector<8x8xf32>, vector<8x32xf32>, vector<8x32xf32> -> vector<8x32xf32>
    %40 = arith.addf %19, %39 : vector<8x32xf32>
    %41 = vector.extract_strided_slice %15 {offsets = [0, 8], sizes = [8, 8], strides = [1, 1]} : vector<8x32xf32> to vector<8x8xf32>
    %42 = vector.extract_strided_slice %16 {offsets = [0, 8], sizes = [8, 8], strides = [1, 1]} : vector<8x32xf32> to vector<8x8xf32>
    %cst_19 = arith.constant dense<0.000000e+00> : vector<8x8xf32>
    %43 = tpu.matmul %41, %42, %cst_19 {dimension_numbers = #tpu.dot_dimension_numbers<[1], [1], [0], [0], [0, 0, 1, 0], [], []>} : vector<8x8xf32>, vector<8x8xf32>, vector<8x8xf32> -> vector<8x8xf32>
    %cst_20 = arith.constant 0.353553385 : f32
    %44 = vector.broadcast %cst_20 : f32 to vector<8x8xf32>
    %45 = arith.mulf %43, %44 : vector<8x8xf32>
    %46 = arith.addf %45, %18 : vector<8x8xf32>
    %cst_21 = arith.constant dense<0xFF800000> : vector<8xf32>
    %47 = vector.multi_reduction <maximumf>, %46, %cst_21 [1] : vector<8x8xf32> to vector<8xf32>
    %48 = vector.shape_cast %47 : vector<8xf32> to vector<8x1xf32>
    %49 = vector.broadcast %48 : vector<8x1xf32> to vector<8x8xf32>
    %50 = arith.subf %46, %49 : vector<8x8xf32>
    %51 = math.exp %50 : vector<8x8xf32>
    %cst_22 = arith.constant dense<0.000000e+00> : vector<8xf32>
    %52 = vector.multi_reduction <add>, %51, %cst_22 [1] : vector<8x8xf32> to vector<8xf32>
    %53 = vector.shape_cast %52 : vector<8xf32> to vector<8x1xf32>
    %54 = tpu.reciprocal %53 {approx = true} : vector<8x1xf32> -> vector<8x1xf32>
    %55 = vector.broadcast %54 : vector<8x1xf32> to vector<8x8xf32>
    %56 = arith.mulf %51, %55 : vector<8x8xf32>
    %57 = vector.extract_strided_slice %17 {offsets = [0, 8], sizes = [8, 8], strides = [1, 1]} : vector<8x32xf32> to vector<8x8xf32>
    %cst_23 = arith.constant dense<0.000000e+00> : vector<8x8xf32>
    %58 = tpu.matmul %56, %57, %cst_23 {dimension_numbers = #tpu.dot_dimension_numbers<[1], [0], [0], [1], [0, 0, 1, 1], [], []>} : vector<8x8xf32>, vector<8x8xf32>, vector<8x8xf32> -> vector<8x8xf32>
    %59 = vector.extract_strided_slice %12 {offsets = [8, 0], sizes = [8, 32], strides = [1, 1]} : vector<32x32xf32> to vector<8x32xf32>
    %cst_24 = arith.constant dense<0.000000e+00> : vector<8x32xf32>
    %60 = tpu.matmul %58, %59, %cst_24 {dimension_numbers = #tpu.dot_dimension_numbers<[1], [0], [0], [1], [0, 0, 1, 1], [], []>} : vector<8x8xf32>, vector<8x32xf32>, vector<8x32xf32> -> vector<8x32xf32>
    %61 = arith.addf %40, %60 : vector<8x32xf32>
    %62 = vector.extract_strided_slice %15 {offsets = [0, 16], sizes = [8, 8], strides = [1, 1]} : vector<8x32xf32> to vector<8x8xf32>
    %63 = vector.extract_strided_slice %16 {offsets = [0, 16], sizes = [8, 8], strides = [1, 1]} : vector<8x32xf32> to vector<8x8xf32>
    %cst_25 = arith.constant dense<0.000000e+00> : vector<8x8xf32>
    %64 = tpu.matmul %62, %63, %cst_25 {dimension_numbers = #tpu.dot_dimension_numbers<[1], [1], [0], [0], [0, 0, 1, 0], [], []>} : vector<8x8xf32>, vector<8x8xf32>, vector<8x8xf32> -> vector<8x8xf32>
    %cst_26 = arith.constant 0.353553385 : f32
    %65 = vector.broadcast %cst_26 : f32 to vector<8x8xf32>
    %66 = arith.mulf %64, %65 : vector<8x8xf32>
    %67 = arith.addf %66, %18 : vector<8x8xf32>
    %cst_27 = arith.constant dense<0xFF800000> : vector<8xf32>
    %68 = vector.multi_reduction <maximumf>, %67, %cst_27 [1] : vector<8x8xf32> to vector<8xf32>
    %69 = vector.shape_cast %68 : vector<8xf32> to vector<8x1xf32>
    %70 = vector.broadcast %69 : vector<8x1xf32> to vector<8x8xf32>
    %71 = arith.subf %67, %70 : vector<8x8xf32>
    %72 = math.exp %71 : vector<8x8xf32>
    %cst_28 = arith.constant dense<0.000000e+00> : vector<8xf32>
    %73 = vector.multi_reduction <add>, %72, %cst_28 [1] : vector<8x8xf32> to vector<8xf32>
    %74 = vector.shape_cast %73 : vector<8xf32> to vector<8x1xf32>
    %75 = tpu.reciprocal %74 {approx = true} : vector<8x1xf32> -> vector<8x1xf32>
    %76 = vector.broadcast %75 : vector<8x1xf32> to vector<8x8xf32>
    %77 = arith.mulf %72, %76 : vector<8x8xf32>
    %78 = vector.extract_strided_slice %17 {offsets = [0, 16], sizes = [8, 8], strides = [1, 1]} : vector<8x32xf32> to vector<8x8xf32>
    %cst_29 = arith.constant dense<0.000000e+00> : vector<8x8xf32>
    %79 = tpu.matmul %77, %78, %cst_29 {dimension_numbers = #tpu.dot_dimension_numbers<[1], [0], [0], [1], [0, 0, 1, 1], [], []>} : vector<8x8xf32>, vector<8x8xf32>, vector<8x8xf32> -> vector<8x8xf32>
    %80 = vector.extract_strided_slice %12 {offsets = [16, 0], sizes = [8, 32], strides = [1, 1]} : vector<32x32xf32> to vector<8x32xf32>
    %cst_30 = arith.constant dense<0.000000e+00> : vector<8x32xf32>
    %81 = tpu.matmul %79, %80, %cst_30 {dimension_numbers = #tpu.dot_dimension_numbers<[1], [0], [0], [1], [0, 0, 1, 1], [], []>} : vector<8x8xf32>, vector<8x32xf32>, vector<8x32xf32> -> vector<8x32xf32>
    %82 = arith.addf %61, %81 : vector<8x32xf32>
    %83 = vector.extract_strided_slice %15 {offsets = [0, 24], sizes = [8, 8], strides = [1, 1]} : vector<8x32xf32> to vector<8x8xf32>
    %84 = vector.extract_strided_slice %16 {offsets = [0, 24], sizes = [8, 8], strides = [1, 1]} : vector<8x32xf32> to vector<8x8xf32>
    %cst_31 = arith.constant dense<0.000000e+00> : vector<8x8xf32>
    %85 = tpu.matmul %83, %84, %cst_31 {dimension_numbers = #tpu.dot_dimension_numbers<[1], [1], [0], [0], [0, 0, 1, 0], [], []>} : vector<8x8xf32>, vector<8x8xf32>, vector<8x8xf32> -> vector<8x8xf32>
    %cst_32 = arith.constant 0.353553385 : f32
    %86 = vector.broadcast %cst_32 : f32 to vector<8x8xf32>
    %87 = arith.mulf %85, %86 : vector<8x8xf32>
    %88 = arith.addf %87, %18 : vector<8x8xf32>
    %cst_33 = arith.constant dense<0xFF800000> : vector<8xf32>
    %89 = vector.multi_reduction <maximumf>, %88, %cst_33 [1] : vector<8x8xf32> to vector<8xf32>
    %90 = vector.shape_cast %89 : vector<8xf32> to vector<8x1xf32>
    %91 = vector.broadcast %90 : vector<8x1xf32> to vector<8x8xf32>
    %92 = arith.subf %88, %91 : vector<8x8xf32>
    %93 = math.exp %92 : vector<8x8xf32>
    %cst_34 = arith.constant dense<0.000000e+00> : vector<8xf32>
    %94 = vector.multi_reduction <add>, %93, %cst_34 [1] : vector<8x8xf32> to vector<8xf32>
    %95 = vector.shape_cast %94 : vector<8xf32> to vector<8x1xf32>
    %96 = tpu.reciprocal %95 {approx = true} : vector<8x1xf32> -> vector<8x1xf32>
    %97 = vector.broadcast %96 : vector<8x1xf32> to vector<8x8xf32>
    %98 = arith.mulf %93, %97 : vector<8x8xf32>
    %99 = vector.extract_strided_slice %17 {offsets = [0, 24], sizes = [8, 8], strides = [1, 1]} : vector<8x32xf32> to vector<8x8xf32>
    %cst_35 = arith.constant dense<0.000000e+00> : vector<8x8xf32>
    %100 = tpu.matmul %98, %99, %cst_35 {dimension_numbers = #tpu.dot_dimension_numbers<[1], [0], [0], [1], [0, 0, 1, 1], [], []>} : vector<8x8xf32>, vector<8x8xf32>, vector<8x8xf32> -> vector<8x8xf32>
    %101 = vector.extract_strided_slice %12 {offsets = [24, 0], sizes = [8, 32], strides = [1, 1]} : vector<32x32xf32> to vector<8x32xf32>
    %cst_36 = arith.constant dense<0.000000e+00> : vector<8x32xf32>
    %102 = tpu.matmul %100, %101, %cst_36 {dimension_numbers = #tpu.dot_dimension_numbers<[1], [0], [0], [1], [0, 0, 1, 1], [], []>} : vector<8x8xf32>, vector<8x32xf32>, vector<8x32xf32> -> vector<8x32xf32>
    %103 = arith.addf %82, %102 : vector<8x32xf32>
    %104 = vector.broadcast %13 : vector<1x32xf32> to vector<8x32xf32>
    %105 = arith.addf %103, %104 : vector<8x32xf32>
    %106 = vector.extract_strided_slice %9 {offsets = [8, 0], sizes = [8, 32], strides = [1, 1]} : vector<16x96xf32> to vector<8x32xf32>
    %107 = vector.extract_strided_slice %9 {offsets = [8, 32], sizes = [8, 32], strides = [1, 1]} : vector<16x96xf32> to vector<8x32xf32>
    %108 = vector.extract_strided_slice %9 {offsets = [8, 64], sizes = [8, 32], strides = [1, 1]} : vector<16x96xf32> to vector<8x32xf32>
    %109 = vector.extract_strided_slice %14 {offsets = [8, 0], sizes = [8, 8], strides = [1, 1]} : vector<16x8xf32> to vector<8x8xf32>
    %cst_37 = arith.constant 0.000000e+00 : f32
    %110 = vector.broadcast %cst_37 : f32 to vector<8x32xf32>
    %111 = vector.extract_strided_slice %106 {offsets = [0, 0], sizes = [8, 8], strides = [1, 1]} : vector<8x32xf32> to vector<8x8xf32>
    %112 = vector.extract_strided_slice %107 {offsets = [0, 0], sizes = [8, 8], strides = [1, 1]} : vector<8x32xf32> to vector<8x8xf32>
    %cst_38 = arith.constant dense<0.000000e+00> : vector<8x8xf32>
    %113 = tpu.matmul %111, %112, %cst_38 {dimension_numbers = #tpu.dot_dimension_numbers<[1], [1], [0], [0], [0, 0, 1, 0], [], []>} : vector<8x8xf32>, vector<8x8xf32>, vector<8x8xf32> -> vector<8x8xf32>
    %cst_39 = arith.constant 0.353553385 : f32
    %114 = vector.broadcast %cst_39 : f32 to vector<8x8xf32>
    %115 = arith.mulf %113, %114 : vector<8x8xf32>
    %116 = arith.addf %115, %109 : vector<8x8xf32>
    %cst_40 = arith.constant dense<0xFF800000> : vector<8xf32>
    %117 = vector.multi_reduction <maximumf>, %116, %cst_40 [1] : vector<8x8xf32> to vector<8xf32>
    %118 = vector.shape_cast %117 : vector<8xf32> to vector<8x1xf32>
    %119 = vector.broadcast %118 : vector<8x1xf32> to vector<8x8xf32>
    %120 = arith.subf %116, %119 : vector<8x8xf32>
    %121 = math.exp %120 : vector<8x8xf32>
    %cst_41 = arith.constant dense<0.000000e+00> : vector<8xf32>
    %122 = vector.multi_reduction <add>, %121, %cst_41 [1] : vector<8x8xf32> to vector<8xf32>
    %123 = vector.shape_cast %122 : vector<8xf32> to vector<8x1xf32>
    %124 = tpu.reciprocal %123 {approx = true} : vector<8x1xf32> -> vector<8x1xf32>
    %125 = vector.broadcast %124 : vector<8x1xf32> to vector<8x8xf32>
    %126 = arith.mulf %121, %125 : vector<8x8xf32>
    %127 = vector.extract_strided_slice %108 {offsets = [0, 0], sizes = [8, 8], strides = [1, 1]} : vector<8x32xf32> to vector<8x8xf32>
    %cst_42 = arith.constant dense<0.000000e+00> : vector<8x8xf32>
    %128 = tpu.matmul %126, %127, %cst_42 {dimension_numbers = #tpu.dot_dimension_numbers<[1], [0], [0], [1], [0, 0, 1, 1], [], []>} : vector<8x8xf32>, vector<8x8xf32>, vector<8x8xf32> -> vector<8x8xf32>
    %129 = vector.extract_strided_slice %12 {offsets = [0, 0], sizes = [8, 32], strides = [1, 1]} : vector<32x32xf32> to vector<8x32xf32>
    %cst_43 = arith.constant dense<0.000000e+00> : vector<8x32xf32>
    %130 = tpu.matmul %128, %129, %cst_43 {dimension_numbers = #tpu.dot_dimension_numbers<[1], [0], [0], [1], [0, 0, 1, 1], [], []>} : vector<8x8xf32>, vector<8x32xf32>, vector<8x32xf32> -> vector<8x32xf32>
    %131 = arith.addf %110, %130 : vector<8x32xf32>
    %132 = vector.extract_strided_slice %106 {offsets = [0, 8], sizes = [8, 8], strides = [1, 1]} : vector<8x32xf32> to vector<8x8xf32>
    %133 = vector.extract_strided_slice %107 {offsets = [0, 8], sizes = [8, 8], strides = [1, 1]} : vector<8x32xf32> to vector<8x8xf32>
    %cst_44 = arith.constant dense<0.000000e+00> : vector<8x8xf32>
    %134 = tpu.matmul %132, %133, %cst_44 {dimension_numbers = #tpu.dot_dimension_numbers<[1], [1], [0], [0], [0, 0, 1, 0], [], []>} : vector<8x8xf32>, vector<8x8xf32>, vector<8x8xf32> -> vector<8x8xf32>
    %cst_45 = arith.constant 0.353553385 : f32
    %135 = vector.broadcast %cst_45 : f32 to vector<8x8xf32>
    %136 = arith.mulf %134, %135 : vector<8x8xf32>
    %137 = arith.addf %136, %109 : vector<8x8xf32>
    %cst_46 = arith.constant dense<0xFF800000> : vector<8xf32>
    %138 = vector.multi_reduction <maximumf>, %137, %cst_46 [1] : vector<8x8xf32> to vector<8xf32>
    %139 = vector.shape_cast %138 : vector<8xf32> to vector<8x1xf32>
    %140 = vector.broadcast %139 : vector<8x1xf32> to vector<8x8xf32>
    %141 = arith.subf %137, %140 : vector<8x8xf32>
    %142 = math.exp %141 : vector<8x8xf32>
    %cst_47 = arith.constant dense<0.000000e+00> : vector<8xf32>
    %143 = vector.multi_reduction <add>, %142, %cst_47 [1] : vector<8x8xf32> to vector<8xf32>
    %144 = vector.shape_cast %143 : vector<8xf32> to vector<8x1xf32>
    %145 = tpu.reciprocal %144 {approx = true} : vector<8x1xf32> -> vector<8x1xf32>
    %146 = vector.broadcast %145 : vector<8x1xf32> to vector<8x8xf32>
    %147 = arith.mulf %142, %146 : vector<8x8xf32>
    %148 = vector.extract_strided_slice %108 {offsets = [0, 8], sizes = [8, 8], strides = [1, 1]} : vector<8x32xf32> to vector<8x8xf32>
    %cst_48 = arith.constant dense<0.000000e+00> : vector<8x8xf32>
    %149 = tpu.matmul %147, %148, %cst_48 {dimension_numbers = #tpu.dot_dimension_numbers<[1], [0], [0], [1], [0, 0, 1, 1], [], []>} : vector<8x8xf32>, vector<8x8xf32>, vector<8x8xf32> -> vector<8x8xf32>
    %150 = vector.extract_strided_slice %12 {offsets = [8, 0], sizes = [8, 32], strides = [1, 1]} : vector<32x32xf32> to vector<8x32xf32>
    %cst_49 = arith.constant dense<0.000000e+00> : vector<8x32xf32>
    %151 = tpu.matmul %149, %150, %cst_49 {dimension_numbers = #tpu.dot_dimension_numbers<[1], [0], [0], [1], [0, 0, 1, 1], [], []>} : vector<8x8xf32>, vector<8x32xf32>, vector<8x32xf32> -> vector<8x32xf32>
    %152 = arith.addf %131, %151 : vector<8x32xf32>
    %153 = vector.extract_strided_slice %106 {offsets = [0, 16], sizes = [8, 8], strides = [1, 1]} : vector<8x32xf32> to vector<8x8xf32>
    %154 = vector.extract_strided_slice %107 {offsets = [0, 16], sizes = [8, 8], strides = [1, 1]} : vector<8x32xf32> to vector<8x8xf32>
    %cst_50 = arith.constant dense<0.000000e+00> : vector<8x8xf32>
    %155 = tpu.matmul %153, %154, %cst_50 {dimension_numbers = #tpu.dot_dimension_numbers<[1], [1], [0], [0], [0, 0, 1, 0], [], []>} : vector<8x8xf32>, vector<8x8xf32>, vector<8x8xf32> -> vector<8x8xf32>
    %cst_51 = arith.constant 0.353553385 : f32
    %156 = vector.broadcast %cst_51 : f32 to vector<8x8xf32>
    %157 = arith.mulf %155, %156 : vector<8x8xf32>
    %158 = arith.addf %157, %109 : vector<8x8xf32>
    %cst_52 = arith.constant dense<0xFF800000> : vector<8xf32>
    %159 = vector.multi_reduction <maximumf>, %158, %cst_52 [1] : vector<8x8xf32> to vector<8xf32>
    %160 = vector.shape_cast %159 : vector<8xf32> to vector<8x1xf32>
    %161 = vector.broadcast %160 : vector<8x1xf32> to vector<8x8xf32>
    %162 = arith.subf %158, %161 : vector<8x8xf32>
    %163 = math.exp %162 : vector<8x8xf32>
    %cst_53 = arith.constant dense<0.000000e+00> : vector<8xf32>
    %164 = vector.multi_reduction <add>, %163, %cst_53 [1] : vector<8x8xf32> to vector<8xf32>
    %165 = vector.shape_cast %164 : vector<8xf32> to vector<8x1xf32>
    %166 = tpu.reciprocal %165 {approx = true} : vector<8x1xf32> -> vector<8x1xf32>
    %167 = vector.broadcast %166 : vector<8x1xf32> to vector<8x8xf32>
    %168 = arith.mulf %163, %167 : vector<8x8xf32>
    %169 = vector.extract_strided_slice %108 {offsets = [0, 16], sizes = [8, 8], strides = [1, 1]} : vector<8x32xf32> to vector<8x8xf32>
    %cst_54 = arith.constant dense<0.000000e+00> : vector<8x8xf32>
    %170 = tpu.matmul %168, %169, %cst_54 {dimension_numbers = #tpu.dot_dimension_numbers<[1], [0], [0], [1], [0, 0, 1, 1], [], []>} : vector<8x8xf32>, vector<8x8xf32>, vector<8x8xf32> -> vector<8x8xf32>
    %171 = vector.extract_strided_slice %12 {offsets = [16, 0], sizes = [8, 32], strides = [1, 1]} : vector<32x32xf32> to vector<8x32xf32>
    %cst_55 = arith.constant dense<0.000000e+00> : vector<8x32xf32>
    %172 = tpu.matmul %170, %171, %cst_55 {dimension_numbers = #tpu.dot_dimension_numbers<[1], [0], [0], [1], [0, 0, 1, 1], [], []>} : vector<8x8xf32>, vector<8x32xf32>, vector<8x32xf32> -> vector<8x32xf32>
    %173 = arith.addf %152, %172 : vector<8x32xf32>
    %174 = vector.extract_strided_slice %106 {offsets = [0, 24], sizes = [8, 8], strides = [1, 1]} : vector<8x32xf32> to vector<8x8xf32>
    %175 = vector.extract_strided_slice %107 {offsets = [0, 24], sizes = [8, 8], strides = [1, 1]} : vector<8x32xf32> to vector<8x8xf32>
    %cst_56 = arith.constant dense<0.000000e+00> : vector<8x8xf32>
    %176 = tpu.matmul %174, %175, %cst_56 {dimension_numbers = #tpu.dot_dimension_numbers<[1], [1], [0], [0], [0, 0, 1, 0], [], []>} : vector<8x8xf32>, vector<8x8xf32>, vector<8x8xf32> -> vector<8x8xf32>
    %cst_57 = arith.constant 0.353553385 : f32
    %177 = vector.broadcast %cst_57 : f32 to vector<8x8xf32>
    %178 = arith.mulf %176, %177 : vector<8x8xf32>
    %179 = arith.addf %178, %109 : vector<8x8xf32>
    %cst_58 = arith.constant dense<0xFF800000> : vector<8xf32>
    %180 = vector.multi_reduction <maximumf>, %179, %cst_58 [1] : vector<8x8xf32> to vector<8xf32>
    %181 = vector.shape_cast %180 : vector<8xf32> to vector<8x1xf32>
    %182 = vector.broadcast %181 : vector<8x1xf32> to vector<8x8xf32>
    %183 = arith.subf %179, %182 : vector<8x8xf32>
    %184 = math.exp %183 : vector<8x8xf32>
    %cst_59 = arith.constant dense<0.000000e+00> : vector<8xf32>
    %185 = vector.multi_reduction <add>, %184, %cst_59 [1] : vector<8x8xf32> to vector<8xf32>
    %186 = vector.shape_cast %185 : vector<8xf32> to vector<8x1xf32>
    %187 = tpu.reciprocal %186 {approx = true} : vector<8x1xf32> -> vector<8x1xf32>
    %188 = vector.broadcast %187 : vector<8x1xf32> to vector<8x8xf32>
    %189 = arith.mulf %184, %188 : vector<8x8xf32>
    %190 = vector.extract_strided_slice %108 {offsets = [0, 24], sizes = [8, 8], strides = [1, 1]} : vector<8x32xf32> to vector<8x8xf32>
    %cst_60 = arith.constant dense<0.000000e+00> : vector<8x8xf32>
    %191 = tpu.matmul %189, %190, %cst_60 {dimension_numbers = #tpu.dot_dimension_numbers<[1], [0], [0], [1], [0, 0, 1, 1], [], []>} : vector<8x8xf32>, vector<8x8xf32>, vector<8x8xf32> -> vector<8x8xf32>
    %192 = vector.extract_strided_slice %12 {offsets = [24, 0], sizes = [8, 32], strides = [1, 1]} : vector<32x32xf32> to vector<8x32xf32>
    %cst_61 = arith.constant dense<0.000000e+00> : vector<8x32xf32>
    %193 = tpu.matmul %191, %192, %cst_61 {dimension_numbers = #tpu.dot_dimension_numbers<[1], [0], [0], [1], [0, 0, 1, 1], [], []>} : vector<8x8xf32>, vector<8x32xf32>, vector<8x32xf32> -> vector<8x32xf32>
    %194 = arith.addf %173, %193 : vector<8x32xf32>
    %195 = vector.broadcast %13 : vector<1x32xf32> to vector<8x32xf32>
    %196 = arith.addf %194, %195 : vector<8x32xf32>
    %197 = tpu.concatenate %105, %196 in 0 : vector<8x32xf32>, vector<8x32xf32> -> vector<16x32xf32>
    %198 = arith.addf %1, %197 : vector<16x32xf32>
    %199 = vector.extract_strided_slice %0 {offsets = [2, 0], sizes = [1, 32], strides = [1, 1]} : vector<16x128xf32> to vector<1x32xf32>
    %200 = vector.extract_strided_slice %0 {offsets = [3, 0], sizes = [1, 32], strides = [1, 1]} : vector<16x128xf32> to vector<1x32xf32>
    %cst_62 = arith.constant dense<0.000000e+00> : vector<16xf32>
    %201 = vector.multi_reduction <add>, %198, %cst_62 [1] : vector<16x32xf32> to vector<16xf32>
    %202 = vector.shape_cast %201 : vector<16xf32> to vector<16x1xf32>
    %cst_63 = arith.constant 3.200000e+01 : f32
    %203 = vector.broadcast %cst_63 : f32 to vector<16x1xf32>
    %204 = arith.divf %202, %203 : vector<16x1xf32>
    %205 = vector.broadcast %204 : vector<16x1xf32> to vector<16x32xf32>
    %206 = arith.subf %198, %205 : vector<16x32xf32>
    %207 = arith.mulf %206, %206 : vector<16x32xf32>
    %cst_64 = arith.constant dense<0.000000e+00> : vector<16xf32>
    %208 = vector.multi_reduction <add>, %207, %cst_64 [1] : vector<16x32xf32> to vector<16xf32>
    %209 = vector.shape_cast %208 : vector<16xf32> to vector<16x1xf32>
    %cst_65 = arith.constant 3.200000e+01 : f32
    %210 = vector.broadcast %cst_65 : f32 to vector<16x1xf32>
    %211 = arith.divf %209, %210 : vector<16x1xf32>
    %212 = vector.broadcast %204 : vector<16x1xf32> to vector<16x32xf32>
    %213 = arith.subf %198, %212 : vector<16x32xf32>
    %cst_66 = arith.constant 9.99999974E-6 : f32
    %214 = vector.broadcast %cst_66 : f32 to vector<16x1xf32>
    %215 = arith.addf %211, %214 : vector<16x1xf32>
    %216 = math.rsqrt %215 : vector<16x1xf32>
    %217 = vector.broadcast %216 : vector<16x1xf32> to vector<16x32xf32>
    %218 = arith.mulf %213, %217 : vector<16x32xf32>
    %219 = vector.broadcast %199 : vector<1x32xf32> to vector<16x32xf32>
    %220 = arith.mulf %218, %219 : vector<16x32xf32>
    %221 = vector.broadcast %200 : vector<1x32xf32> to vector<16x32xf32>
    %222 = arith.addf %220, %221 : vector<16x32xf32>
    %c2 = arith.constant 2 : index
    %c0_67 = arith.constant 0 : index
    %c0_68 = arith.constant 0 : index
    %223 = vector.load %arg4[%c2, %c0_67, %c0_68] : memref<6x32x128xf32, #tpu.memory_space<vmem>>, vector<1x32x128xf32>
    %224 = vector.shape_cast %223 : vector<1x32x128xf32> to vector<32x128xf32>
    %225 = vector.extract_strided_slice %224 {offsets = [0, 0], sizes = [32, 32], strides = [1, 1]} : vector<32x128xf32> to vector<32x32xf32>
    %c3 = arith.constant 3 : index
    %c0_69 = arith.constant 0 : index
    %c0_70 = arith.constant 0 : index
    %226 = vector.load %arg4[%c3, %c0_69, %c0_70] : memref<6x32x128xf32, #tpu.memory_space<vmem>>, vector<1x32x128xf32>
    %227 = vector.shape_cast %226 : vector<1x32x128xf32> to vector<32x128xf32>
    %228 = vector.extract_strided_slice %227 {offsets = [0, 0], sizes = [32, 64], strides = [1, 1]} : vector<32x128xf32> to vector<32x64xf32>
    %c4 = arith.constant 4 : index
    %c0_71 = arith.constant 0 : index
    %c0_72 = arith.constant 0 : index
    %229 = vector.load %arg4[%c4, %c0_71, %c0_72] : memref<6x32x128xf32, #tpu.memory_space<vmem>>, vector<1x32x128xf32>
    %230 = vector.shape_cast %229 : vector<1x32x128xf32> to vector<32x128xf32>
    %231 = vector.extract_strided_slice %230 {offsets = [0, 0], sizes = [32, 32], strides = [1, 1]} : vector<32x128xf32> to vector<32x32xf32>
    %232 = vector.extract_strided_slice %0 {offsets = [6, 0], sizes = [1, 32], strides = [1, 1]} : vector<16x128xf32> to vector<1x32xf32>
    %cst_73 = arith.constant dense<0.000000e+00> : vector<16x32xf32>
    %233 = tpu.matmul %222, %225, %cst_73 {dimension_numbers = #tpu.dot_dimension_numbers<[1], [0], [0], [1], [0, 0, 1, 1], [], []>} : vector<16x32xf32>, vector<32x32xf32>, vector<16x32xf32> -> vector<16x32xf32>
    %234 = vector.extract_strided_slice %0 {offsets = [4, 0], sizes = [1, 32], strides = [1, 1]} : vector<16x128xf32> to vector<1x32xf32>
    %235 = vector.broadcast %234 : vector<1x32xf32> to vector<16x32xf32>
    %236 = arith.addf %233, %235 : vector<16x32xf32>
    %cst_74 = arith.constant dense<0.000000e+00> : vector<32x64xf32>
    %237 = tpu.matmul %2, %228, %cst_74 {dimension_numbers = #tpu.dot_dimension_numbers<[1], [0], [0], [1], [0, 0, 1, 1], [], []>} : vector<32x32xf32>, vector<32x64xf32>, vector<32x64xf32> -> vector<32x64xf32>
    %238 = vector.extract_strided_slice %0 {offsets = [5, 0], sizes = [1, 64], strides = [1, 1]} : vector<16x128xf32> to vector<1x64xf32>
    %239 = vector.broadcast %238 : vector<1x64xf32> to vector<32x64xf32>
    %240 = arith.addf %237, %239 : vector<32x64xf32>
    %c0_75 = arith.constant 0 : index
    %c0_76 = arith.constant 0 : index
    %241 = vector.load %arg3[%c0_75, %c0_76] : memref<2x16xf32, #tpu.memory_space<vmem>>, vector<2x16xf32>
    %242 = vector.extract_strided_slice %236 {offsets = [0, 0], sizes = [8, 32], strides = [1, 1]} : vector<16x32xf32> to vector<8x32xf32>
    %243 = vector.extract_strided_slice %240 {offsets = [0, 0], sizes = [16, 32], strides = [1, 1]} : vector<32x64xf32> to vector<16x32xf32>
    %244 = vector.extract_strided_slice %240 {offsets = [0, 32], sizes = [16, 32], strides = [1, 1]} : vector<32x64xf32> to vector<16x32xf32>
    %245 = vector.extract_strided_slice %241 {offsets = [0, 0], sizes = [1, 16], strides = [1, 1]} : vector<2x16xf32> to vector<1x16xf32>
    %cst_77 = arith.constant 0.000000e+00 : f32
    %246 = vector.broadcast %cst_77 : f32 to vector<8x32xf32>
    %247 = vector.extract_strided_slice %242 {offsets = [0, 0], sizes = [8, 8], strides = [1, 1]} : vector<8x32xf32> to vector<8x8xf32>
    %248 = vector.extract_strided_slice %243 {offsets = [0, 0], sizes = [16, 8], strides = [1, 1]} : vector<16x32xf32> to vector<16x8xf32>
    %cst_78 = arith.constant dense<0.000000e+00> : vector<8x16xf32>
    %249 = tpu.matmul %247, %248, %cst_78 {dimension_numbers = #tpu.dot_dimension_numbers<[1], [1], [0], [0], [0, 0, 1, 0], [], []>} : vector<8x8xf32>, vector<16x8xf32>, vector<8x16xf32> -> vector<8x16xf32>
    %cst_79 = arith.constant 0.353553385 : f32
    %250 = vector.broadcast %cst_79 : f32 to vector<8x16xf32>
    %251 = arith.mulf %249, %250 : vector<8x16xf32>
    %252 = vector.broadcast %245 : vector<1x16xf32> to vector<8x16xf32>
    %253 = arith.addf %251, %252 : vector<8x16xf32>
    %cst_80 = arith.constant dense<0xFF800000> : vector<8xf32>
    %254 = vector.multi_reduction <maximumf>, %253, %cst_80 [1] : vector<8x16xf32> to vector<8xf32>
    %255 = vector.shape_cast %254 : vector<8xf32> to vector<8x1xf32>
    %256 = vector.broadcast %255 : vector<8x1xf32> to vector<8x16xf32>
    %257 = arith.subf %253, %256 : vector<8x16xf32>
    %258 = math.exp %257 : vector<8x16xf32>
    %cst_81 = arith.constant dense<0.000000e+00> : vector<8xf32>
    %259 = vector.multi_reduction <add>, %258, %cst_81 [1] : vector<8x16xf32> to vector<8xf32>
    %260 = vector.shape_cast %259 : vector<8xf32> to vector<8x1xf32>
    %261 = tpu.reciprocal %260 {approx = true} : vector<8x1xf32> -> vector<8x1xf32>
    %262 = vector.broadcast %261 : vector<8x1xf32> to vector<8x16xf32>
    %263 = arith.mulf %258, %262 : vector<8x16xf32>
    %264 = vector.extract_strided_slice %244 {offsets = [0, 0], sizes = [16, 8], strides = [1, 1]} : vector<16x32xf32> to vector<16x8xf32>
    %cst_82 = arith.constant dense<0.000000e+00> : vector<8x8xf32>
    %265 = tpu.matmul %263, %264, %cst_82 {dimension_numbers = #tpu.dot_dimension_numbers<[1], [0], [0], [1], [0, 0, 1, 1], [], []>} : vector<8x16xf32>, vector<16x8xf32>, vector<8x8xf32> -> vector<8x8xf32>
    %266 = vector.extract_strided_slice %231 {offsets = [0, 0], sizes = [8, 32], strides = [1, 1]} : vector<32x32xf32> to vector<8x32xf32>
    %cst_83 = arith.constant dense<0.000000e+00> : vector<8x32xf32>
    %267 = tpu.matmul %265, %266, %cst_83 {dimension_numbers = #tpu.dot_dimension_numbers<[1], [0], [0], [1], [0, 0, 1, 1], [], []>} : vector<8x8xf32>, vector<8x32xf32>, vector<8x32xf32> -> vector<8x32xf32>
    %268 = arith.addf %246, %267 : vector<8x32xf32>
    %269 = vector.extract_strided_slice %242 {offsets = [0, 8], sizes = [8, 8], strides = [1, 1]} : vector<8x32xf32> to vector<8x8xf32>
    %270 = vector.extract_strided_slice %243 {offsets = [0, 8], sizes = [16, 8], strides = [1, 1]} : vector<16x32xf32> to vector<16x8xf32>
    %cst_84 = arith.constant dense<0.000000e+00> : vector<8x16xf32>
    %271 = tpu.matmul %269, %270, %cst_84 {dimension_numbers = #tpu.dot_dimension_numbers<[1], [1], [0], [0], [0, 0, 1, 0], [], []>} : vector<8x8xf32>, vector<16x8xf32>, vector<8x16xf32> -> vector<8x16xf32>
    %cst_85 = arith.constant 0.353553385 : f32
    %272 = vector.broadcast %cst_85 : f32 to vector<8x16xf32>
    %273 = arith.mulf %271, %272 : vector<8x16xf32>
    %274 = vector.broadcast %245 : vector<1x16xf32> to vector<8x16xf32>
    %275 = arith.addf %273, %274 : vector<8x16xf32>
    %cst_86 = arith.constant dense<0xFF800000> : vector<8xf32>
    %276 = vector.multi_reduction <maximumf>, %275, %cst_86 [1] : vector<8x16xf32> to vector<8xf32>
    %277 = vector.shape_cast %276 : vector<8xf32> to vector<8x1xf32>
    %278 = vector.broadcast %277 : vector<8x1xf32> to vector<8x16xf32>
    %279 = arith.subf %275, %278 : vector<8x16xf32>
    %280 = math.exp %279 : vector<8x16xf32>
    %cst_87 = arith.constant dense<0.000000e+00> : vector<8xf32>
    %281 = vector.multi_reduction <add>, %280, %cst_87 [1] : vector<8x16xf32> to vector<8xf32>
    %282 = vector.shape_cast %281 : vector<8xf32> to vector<8x1xf32>
    %283 = tpu.reciprocal %282 {approx = true} : vector<8x1xf32> -> vector<8x1xf32>
    %284 = vector.broadcast %283 : vector<8x1xf32> to vector<8x16xf32>
    %285 = arith.mulf %280, %284 : vector<8x16xf32>
    %286 = vector.extract_strided_slice %244 {offsets = [0, 8], sizes = [16, 8], strides = [1, 1]} : vector<16x32xf32> to vector<16x8xf32>
    %cst_88 = arith.constant dense<0.000000e+00> : vector<8x8xf32>
    %287 = tpu.matmul %285, %286, %cst_88 {dimension_numbers = #tpu.dot_dimension_numbers<[1], [0], [0], [1], [0, 0, 1, 1], [], []>} : vector<8x16xf32>, vector<16x8xf32>, vector<8x8xf32> -> vector<8x8xf32>
    %288 = vector.extract_strided_slice %231 {offsets = [8, 0], sizes = [8, 32], strides = [1, 1]} : vector<32x32xf32> to vector<8x32xf32>
    %cst_89 = arith.constant dense<0.000000e+00> : vector<8x32xf32>
    %289 = tpu.matmul %287, %288, %cst_89 {dimension_numbers = #tpu.dot_dimension_numbers<[1], [0], [0], [1], [0, 0, 1, 1], [], []>} : vector<8x8xf32>, vector<8x32xf32>, vector<8x32xf32> -> vector<8x32xf32>
    %290 = arith.addf %268, %289 : vector<8x32xf32>
    %291 = vector.extract_strided_slice %242 {offsets = [0, 16], sizes = [8, 8], strides = [1, 1]} : vector<8x32xf32> to vector<8x8xf32>
    %292 = vector.extract_strided_slice %243 {offsets = [0, 16], sizes = [16, 8], strides = [1, 1]} : vector<16x32xf32> to vector<16x8xf32>
    %cst_90 = arith.constant dense<0.000000e+00> : vector<8x16xf32>
    %293 = tpu.matmul %291, %292, %cst_90 {dimension_numbers = #tpu.dot_dimension_numbers<[1], [1], [0], [0], [0, 0, 1, 0], [], []>} : vector<8x8xf32>, vector<16x8xf32>, vector<8x16xf32> -> vector<8x16xf32>
    %cst_91 = arith.constant 0.353553385 : f32
    %294 = vector.broadcast %cst_91 : f32 to vector<8x16xf32>
    %295 = arith.mulf %293, %294 : vector<8x16xf32>
    %296 = vector.broadcast %245 : vector<1x16xf32> to vector<8x16xf32>
    %297 = arith.addf %295, %296 : vector<8x16xf32>
    %cst_92 = arith.constant dense<0xFF800000> : vector<8xf32>
    %298 = vector.multi_reduction <maximumf>, %297, %cst_92 [1] : vector<8x16xf32> to vector<8xf32>
    %299 = vector.shape_cast %298 : vector<8xf32> to vector<8x1xf32>
    %300 = vector.broadcast %299 : vector<8x1xf32> to vector<8x16xf32>
    %301 = arith.subf %297, %300 : vector<8x16xf32>
    %302 = math.exp %301 : vector<8x16xf32>
    %cst_93 = arith.constant dense<0.000000e+00> : vector<8xf32>
    %303 = vector.multi_reduction <add>, %302, %cst_93 [1] : vector<8x16xf32> to vector<8xf32>
    %304 = vector.shape_cast %303 : vector<8xf32> to vector<8x1xf32>
    %305 = tpu.reciprocal %304 {approx = true} : vector<8x1xf32> -> vector<8x1xf32>
    %306 = vector.broadcast %305 : vector<8x1xf32> to vector<8x16xf32>
    %307 = arith.mulf %302, %306 : vector<8x16xf32>
    %308 = vector.extract_strided_slice %244 {offsets = [0, 16], sizes = [16, 8], strides = [1, 1]} : vector<16x32xf32> to vector<16x8xf32>
    %cst_94 = arith.constant dense<0.000000e+00> : vector<8x8xf32>
    %309 = tpu.matmul %307, %308, %cst_94 {dimension_numbers = #tpu.dot_dimension_numbers<[1], [0], [0], [1], [0, 0, 1, 1], [], []>} : vector<8x16xf32>, vector<16x8xf32>, vector<8x8xf32> -> vector<8x8xf32>
    %310 = vector.extract_strided_slice %231 {offsets = [16, 0], sizes = [8, 32], strides = [1, 1]} : vector<32x32xf32> to vector<8x32xf32>
    %cst_95 = arith.constant dense<0.000000e+00> : vector<8x32xf32>
    %311 = tpu.matmul %309, %310, %cst_95 {dimension_numbers = #tpu.dot_dimension_numbers<[1], [0], [0], [1], [0, 0, 1, 1], [], []>} : vector<8x8xf32>, vector<8x32xf32>, vector<8x32xf32> -> vector<8x32xf32>
    %312 = arith.addf %290, %311 : vector<8x32xf32>
    %313 = vector.extract_strided_slice %242 {offsets = [0, 24], sizes = [8, 8], strides = [1, 1]} : vector<8x32xf32> to vector<8x8xf32>
    %314 = vector.extract_strided_slice %243 {offsets = [0, 24], sizes = [16, 8], strides = [1, 1]} : vector<16x32xf32> to vector<16x8xf32>
    %cst_96 = arith.constant dense<0.000000e+00> : vector<8x16xf32>
    %315 = tpu.matmul %313, %314, %cst_96 {dimension_numbers = #tpu.dot_dimension_numbers<[1], [1], [0], [0], [0, 0, 1, 0], [], []>} : vector<8x8xf32>, vector<16x8xf32>, vector<8x16xf32> -> vector<8x16xf32>
    %cst_97 = arith.constant 0.353553385 : f32
    %316 = vector.broadcast %cst_97 : f32 to vector<8x16xf32>
    %317 = arith.mulf %315, %316 : vector<8x16xf32>
    %318 = vector.broadcast %245 : vector<1x16xf32> to vector<8x16xf32>
    %319 = arith.addf %317, %318 : vector<8x16xf32>
    %cst_98 = arith.constant dense<0xFF800000> : vector<8xf32>
    %320 = vector.multi_reduction <maximumf>, %319, %cst_98 [1] : vector<8x16xf32> to vector<8xf32>
    %321 = vector.shape_cast %320 : vector<8xf32> to vector<8x1xf32>
    %322 = vector.broadcast %321 : vector<8x1xf32> to vector<8x16xf32>
    %323 = arith.subf %319, %322 : vector<8x16xf32>
    %324 = math.exp %323 : vector<8x16xf32>
    %cst_99 = arith.constant dense<0.000000e+00> : vector<8xf32>
    %325 = vector.multi_reduction <add>, %324, %cst_99 [1] : vector<8x16xf32> to vector<8xf32>
    %326 = vector.shape_cast %325 : vector<8xf32> to vector<8x1xf32>
    %327 = tpu.reciprocal %326 {approx = true} : vector<8x1xf32> -> vector<8x1xf32>
    %328 = vector.broadcast %327 : vector<8x1xf32> to vector<8x16xf32>
    %329 = arith.mulf %324, %328 : vector<8x16xf32>
    %330 = vector.extract_strided_slice %244 {offsets = [0, 24], sizes = [16, 8], strides = [1, 1]} : vector<16x32xf32> to vector<16x8xf32>
    %cst_100 = arith.constant dense<0.000000e+00> : vector<8x8xf32>
    %331 = tpu.matmul %329, %330, %cst_100 {dimension_numbers = #tpu.dot_dimension_numbers<[1], [0], [0], [1], [0, 0, 1, 1], [], []>} : vector<8x16xf32>, vector<16x8xf32>, vector<8x8xf32> -> vector<8x8xf32>
    %332 = vector.extract_strided_slice %231 {offsets = [24, 0], sizes = [8, 32], strides = [1, 1]} : vector<32x32xf32> to vector<8x32xf32>
    %cst_101 = arith.constant dense<0.000000e+00> : vector<8x32xf32>
    %333 = tpu.matmul %331, %332, %cst_101 {dimension_numbers = #tpu.dot_dimension_numbers<[1], [0], [0], [1], [0, 0, 1, 1], [], []>} : vector<8x8xf32>, vector<8x32xf32>, vector<8x32xf32> -> vector<8x32xf32>
    %334 = arith.addf %312, %333 : vector<8x32xf32>
    %335 = vector.broadcast %232 : vector<1x32xf32> to vector<8x32xf32>
    %336 = arith.addf %334, %335 : vector<8x32xf32>
    %337 = vector.extract_strided_slice %236 {offsets = [8, 0], sizes = [8, 32], strides = [1, 1]} : vector<16x32xf32> to vector<8x32xf32>
    %338 = vector.extract_strided_slice %240 {offsets = [16, 0], sizes = [16, 32], strides = [1, 1]} : vector<32x64xf32> to vector<16x32xf32>
    %339 = vector.extract_strided_slice %240 {offsets = [16, 32], sizes = [16, 32], strides = [1, 1]} : vector<32x64xf32> to vector<16x32xf32>
    %340 = vector.extract_strided_slice %241 {offsets = [1, 0], sizes = [1, 16], strides = [1, 1]} : vector<2x16xf32> to vector<1x16xf32>
    %cst_102 = arith.constant 0.000000e+00 : f32
    %341 = vector.broadcast %cst_102 : f32 to vector<8x32xf32>
    %342 = vector.extract_strided_slice %337 {offsets = [0, 0], sizes = [8, 8], strides = [1, 1]} : vector<8x32xf32> to vector<8x8xf32>
    %343 = vector.extract_strided_slice %338 {offsets = [0, 0], sizes = [16, 8], strides = [1, 1]} : vector<16x32xf32> to vector<16x8xf32>
    %cst_103 = arith.constant dense<0.000000e+00> : vector<8x16xf32>
    %344 = tpu.matmul %342, %343, %cst_103 {dimension_numbers = #tpu.dot_dimension_numbers<[1], [1], [0], [0], [0, 0, 1, 0], [], []>} : vector<8x8xf32>, vector<16x8xf32>, vector<8x16xf32> -> vector<8x16xf32>
    %cst_104 = arith.constant 0.353553385 : f32
    %345 = vector.broadcast %cst_104 : f32 to vector<8x16xf32>
    %346 = arith.mulf %344, %345 : vector<8x16xf32>
    %347 = vector.broadcast %340 : vector<1x16xf32> to vector<8x16xf32>
    %348 = arith.addf %346, %347 : vector<8x16xf32>
    %cst_105 = arith.constant dense<0xFF800000> : vector<8xf32>
    %349 = vector.multi_reduction <maximumf>, %348, %cst_105 [1] : vector<8x16xf32> to vector<8xf32>
    %350 = vector.shape_cast %349 : vector<8xf32> to vector<8x1xf32>
    %351 = vector.broadcast %350 : vector<8x1xf32> to vector<8x16xf32>
    %352 = arith.subf %348, %351 : vector<8x16xf32>
    %353 = math.exp %352 : vector<8x16xf32>
    %cst_106 = arith.constant dense<0.000000e+00> : vector<8xf32>
    %354 = vector.multi_reduction <add>, %353, %cst_106 [1] : vector<8x16xf32> to vector<8xf32>
    %355 = vector.shape_cast %354 : vector<8xf32> to vector<8x1xf32>
    %356 = tpu.reciprocal %355 {approx = true} : vector<8x1xf32> -> vector<8x1xf32>
    %357 = vector.broadcast %356 : vector<8x1xf32> to vector<8x16xf32>
    %358 = arith.mulf %353, %357 : vector<8x16xf32>
    %359 = vector.extract_strided_slice %339 {offsets = [0, 0], sizes = [16, 8], strides = [1, 1]} : vector<16x32xf32> to vector<16x8xf32>
    %cst_107 = arith.constant dense<0.000000e+00> : vector<8x8xf32>
    %360 = tpu.matmul %358, %359, %cst_107 {dimension_numbers = #tpu.dot_dimension_numbers<[1], [0], [0], [1], [0, 0, 1, 1], [], []>} : vector<8x16xf32>, vector<16x8xf32>, vector<8x8xf32> -> vector<8x8xf32>
    %361 = vector.extract_strided_slice %231 {offsets = [0, 0], sizes = [8, 32], strides = [1, 1]} : vector<32x32xf32> to vector<8x32xf32>
    %cst_108 = arith.constant dense<0.000000e+00> : vector<8x32xf32>
    %362 = tpu.matmul %360, %361, %cst_108 {dimension_numbers = #tpu.dot_dimension_numbers<[1], [0], [0], [1], [0, 0, 1, 1], [], []>} : vector<8x8xf32>, vector<8x32xf32>, vector<8x32xf32> -> vector<8x32xf32>
    %363 = arith.addf %341, %362 : vector<8x32xf32>
    %364 = vector.extract_strided_slice %337 {offsets = [0, 8], sizes = [8, 8], strides = [1, 1]} : vector<8x32xf32> to vector<8x8xf32>
    %365 = vector.extract_strided_slice %338 {offsets = [0, 8], sizes = [16, 8], strides = [1, 1]} : vector<16x32xf32> to vector<16x8xf32>
    %cst_109 = arith.constant dense<0.000000e+00> : vector<8x16xf32>
    %366 = tpu.matmul %364, %365, %cst_109 {dimension_numbers = #tpu.dot_dimension_numbers<[1], [1], [0], [0], [0, 0, 1, 0], [], []>} : vector<8x8xf32>, vector<16x8xf32>, vector<8x16xf32> -> vector<8x16xf32>
    %cst_110 = arith.constant 0.353553385 : f32
    %367 = vector.broadcast %cst_110 : f32 to vector<8x16xf32>
    %368 = arith.mulf %366, %367 : vector<8x16xf32>
    %369 = vector.broadcast %340 : vector<1x16xf32> to vector<8x16xf32>
    %370 = arith.addf %368, %369 : vector<8x16xf32>
    %cst_111 = arith.constant dense<0xFF800000> : vector<8xf32>
    %371 = vector.multi_reduction <maximumf>, %370, %cst_111 [1] : vector<8x16xf32> to vector<8xf32>
    %372 = vector.shape_cast %371 : vector<8xf32> to vector<8x1xf32>
    %373 = vector.broadcast %372 : vector<8x1xf32> to vector<8x16xf32>
    %374 = arith.subf %370, %373 : vector<8x16xf32>
    %375 = math.exp %374 : vector<8x16xf32>
    %cst_112 = arith.constant dense<0.000000e+00> : vector<8xf32>
    %376 = vector.multi_reduction <add>, %375, %cst_112 [1] : vector<8x16xf32> to vector<8xf32>
    %377 = vector.shape_cast %376 : vector<8xf32> to vector<8x1xf32>
    %378 = tpu.reciprocal %377 {approx = true} : vector<8x1xf32> -> vector<8x1xf32>
    %379 = vector.broadcast %378 : vector<8x1xf32> to vector<8x16xf32>
    %380 = arith.mulf %375, %379 : vector<8x16xf32>
    %381 = vector.extract_strided_slice %339 {offsets = [0, 8], sizes = [16, 8], strides = [1, 1]} : vector<16x32xf32> to vector<16x8xf32>
    %cst_113 = arith.constant dense<0.000000e+00> : vector<8x8xf32>
    %382 = tpu.matmul %380, %381, %cst_113 {dimension_numbers = #tpu.dot_dimension_numbers<[1], [0], [0], [1], [0, 0, 1, 1], [], []>} : vector<8x16xf32>, vector<16x8xf32>, vector<8x8xf32> -> vector<8x8xf32>
    %383 = vector.extract_strided_slice %231 {offsets = [8, 0], sizes = [8, 32], strides = [1, 1]} : vector<32x32xf32> to vector<8x32xf32>
    %cst_114 = arith.constant dense<0.000000e+00> : vector<8x32xf32>
    %384 = tpu.matmul %382, %383, %cst_114 {dimension_numbers = #tpu.dot_dimension_numbers<[1], [0], [0], [1], [0, 0, 1, 1], [], []>} : vector<8x8xf32>, vector<8x32xf32>, vector<8x32xf32> -> vector<8x32xf32>
    %385 = arith.addf %363, %384 : vector<8x32xf32>
    %386 = vector.extract_strided_slice %337 {offsets = [0, 16], sizes = [8, 8], strides = [1, 1]} : vector<8x32xf32> to vector<8x8xf32>
    %387 = vector.extract_strided_slice %338 {offsets = [0, 16], sizes = [16, 8], strides = [1, 1]} : vector<16x32xf32> to vector<16x8xf32>
    %cst_115 = arith.constant dense<0.000000e+00> : vector<8x16xf32>
    %388 = tpu.matmul %386, %387, %cst_115 {dimension_numbers = #tpu.dot_dimension_numbers<[1], [1], [0], [0], [0, 0, 1, 0], [], []>} : vector<8x8xf32>, vector<16x8xf32>, vector<8x16xf32> -> vector<8x16xf32>
    %cst_116 = arith.constant 0.353553385 : f32
    %389 = vector.broadcast %cst_116 : f32 to vector<8x16xf32>
    %390 = arith.mulf %388, %389 : vector<8x16xf32>
    %391 = vector.broadcast %340 : vector<1x16xf32> to vector<8x16xf32>
    %392 = arith.addf %390, %391 : vector<8x16xf32>
    %cst_117 = arith.constant dense<0xFF800000> : vector<8xf32>
    %393 = vector.multi_reduction <maximumf>, %392, %cst_117 [1] : vector<8x16xf32> to vector<8xf32>
    %394 = vector.shape_cast %393 : vector<8xf32> to vector<8x1xf32>
    %395 = vector.broadcast %394 : vector<8x1xf32> to vector<8x16xf32>
    %396 = arith.subf %392, %395 : vector<8x16xf32>
    %397 = math.exp %396 : vector<8x16xf32>
    %cst_118 = arith.constant dense<0.000000e+00> : vector<8xf32>
    %398 = vector.multi_reduction <add>, %397, %cst_118 [1] : vector<8x16xf32> to vector<8xf32>
    %399 = vector.shape_cast %398 : vector<8xf32> to vector<8x1xf32>
    %400 = tpu.reciprocal %399 {approx = true} : vector<8x1xf32> -> vector<8x1xf32>
    %401 = vector.broadcast %400 : vector<8x1xf32> to vector<8x16xf32>
    %402 = arith.mulf %397, %401 : vector<8x16xf32>
    %403 = vector.extract_strided_slice %339 {offsets = [0, 16], sizes = [16, 8], strides = [1, 1]} : vector<16x32xf32> to vector<16x8xf32>
    %cst_119 = arith.constant dense<0.000000e+00> : vector<8x8xf32>
    %404 = tpu.matmul %402, %403, %cst_119 {dimension_numbers = #tpu.dot_dimension_numbers<[1], [0], [0], [1], [0, 0, 1, 1], [], []>} : vector<8x16xf32>, vector<16x8xf32>, vector<8x8xf32> -> vector<8x8xf32>
    %405 = vector.extract_strided_slice %231 {offsets = [16, 0], sizes = [8, 32], strides = [1, 1]} : vector<32x32xf32> to vector<8x32xf32>
    %cst_120 = arith.constant dense<0.000000e+00> : vector<8x32xf32>
    %406 = tpu.matmul %404, %405, %cst_120 {dimension_numbers = #tpu.dot_dimension_numbers<[1], [0], [0], [1], [0, 0, 1, 1], [], []>} : vector<8x8xf32>, vector<8x32xf32>, vector<8x32xf32> -> vector<8x32xf32>
    %407 = arith.addf %385, %406 : vector<8x32xf32>
    %408 = vector.extract_strided_slice %337 {offsets = [0, 24], sizes = [8, 8], strides = [1, 1]} : vector<8x32xf32> to vector<8x8xf32>
    %409 = vector.extract_strided_slice %338 {offsets = [0, 24], sizes = [16, 8], strides = [1, 1]} : vector<16x32xf32> to vector<16x8xf32>
    %cst_121 = arith.constant dense<0.000000e+00> : vector<8x16xf32>
    %410 = tpu.matmul %408, %409, %cst_121 {dimension_numbers = #tpu.dot_dimension_numbers<[1], [1], [0], [0], [0, 0, 1, 0], [], []>} : vector<8x8xf32>, vector<16x8xf32>, vector<8x16xf32> -> vector<8x16xf32>
    %cst_122 = arith.constant 0.353553385 : f32
    %411 = vector.broadcast %cst_122 : f32 to vector<8x16xf32>
    %412 = arith.mulf %410, %411 : vector<8x16xf32>
    %413 = vector.broadcast %340 : vector<1x16xf32> to vector<8x16xf32>
    %414 = arith.addf %412, %413 : vector<8x16xf32>
    %cst_123 = arith.constant dense<0xFF800000> : vector<8xf32>
    %415 = vector.multi_reduction <maximumf>, %414, %cst_123 [1] : vector<8x16xf32> to vector<8xf32>
    %416 = vector.shape_cast %415 : vector<8xf32> to vector<8x1xf32>
    %417 = vector.broadcast %416 : vector<8x1xf32> to vector<8x16xf32>
    %418 = arith.subf %414, %417 : vector<8x16xf32>
    %419 = math.exp %418 : vector<8x16xf32>
    %cst_124 = arith.constant dense<0.000000e+00> : vector<8xf32>
    %420 = vector.multi_reduction <add>, %419, %cst_124 [1] : vector<8x16xf32> to vector<8xf32>
    %421 = vector.shape_cast %420 : vector<8xf32> to vector<8x1xf32>
    %422 = tpu.reciprocal %421 {approx = true} : vector<8x1xf32> -> vector<8x1xf32>
    %423 = vector.broadcast %422 : vector<8x1xf32> to vector<8x16xf32>
    %424 = arith.mulf %419, %423 : vector<8x16xf32>
    %425 = vector.extract_strided_slice %339 {offsets = [0, 24], sizes = [16, 8], strides = [1, 1]} : vector<16x32xf32> to vector<16x8xf32>
    %cst_125 = arith.constant dense<0.000000e+00> : vector<8x8xf32>
    %426 = tpu.matmul %424, %425, %cst_125 {dimension_numbers = #tpu.dot_dimension_numbers<[1], [0], [0], [1], [0, 0, 1, 1], [], []>} : vector<8x16xf32>, vector<16x8xf32>, vector<8x8xf32> -> vector<8x8xf32>
    %427 = vector.extract_strided_slice %231 {offsets = [24, 0], sizes = [8, 32], strides = [1, 1]} : vector<32x32xf32> to vector<8x32xf32>
    %cst_126 = arith.constant dense<0.000000e+00> : vector<8x32xf32>
    %428 = tpu.matmul %426, %427, %cst_126 {dimension_numbers = #tpu.dot_dimension_numbers<[1], [0], [0], [1], [0, 0, 1, 1], [], []>} : vector<8x8xf32>, vector<8x32xf32>, vector<8x32xf32> -> vector<8x32xf32>
    %429 = arith.addf %407, %428 : vector<8x32xf32>
    %430 = vector.broadcast %232 : vector<1x32xf32> to vector<8x32xf32>
    %431 = arith.addf %429, %430 : vector<8x32xf32>
    %432 = tpu.concatenate %336, %431 in 0 : vector<8x32xf32>, vector<8x32xf32> -> vector<16x32xf32>
    %433 = tpu.concatenate %263, %285, %307, %329, %358, %380, %402, %424 in 1 : vector<8x16xf32>, vector<8x16xf32>, vector<8x16xf32>, vector<8x16xf32>, vector<8x16xf32>, vector<8x16xf32>, vector<8x16xf32>, vector<8x16xf32> -> vector<8x128xf32>
    %c0_127 = arith.constant 0 : index
    %c0_128 = arith.constant 0 : index
    %434 = vector.load %arg8[%c0_127, %c0_128] : memref<8x128xf32, #tpu.memory_space<vmem>>, vector<8x128xf32>
    tpu.vector_store %arg8[%c0_127, %c0_128], %433 {strides = array<i32>} : memref<8x128xf32, #tpu.memory_space<vmem>>, vector<8x128xf32>,
    %435 = arith.addf %222, %432 : vector<16x32xf32>
    %436 = vector.extract_strided_slice %0 {offsets = [7, 0], sizes = [1, 32], strides = [1, 1]} : vector<16x128xf32> to vector<1x32xf32>
    %437 = vector.extract_strided_slice %0 {offsets = [8, 0], sizes = [1, 32], strides = [1, 1]} : vector<16x128xf32> to vector<1x32xf32>
    %cst_129 = arith.constant dense<0.000000e+00> : vector<16xf32>
    %438 = vector.multi_reduction <add>, %435, %cst_129 [1] : vector<16x32xf32> to vector<16xf32>
    %439 = vector.shape_cast %438 : vector<16xf32> to vector<16x1xf32>
    %cst_130 = arith.constant 3.200000e+01 : f32
    %440 = vector.broadcast %cst_130 : f32 to vector<16x1xf32>
    %441 = arith.divf %439, %440 : vector<16x1xf32>
    %442 = vector.broadcast %441 : vector<16x1xf32> to vector<16x32xf32>
    %443 = arith.subf %435, %442 : vector<16x32xf32>
    %444 = arith.mulf %443, %443 : vector<16x32xf32>
    %cst_131 = arith.constant dense<0.000000e+00> : vector<16xf32>
    %445 = vector.multi_reduction <add>, %444, %cst_131 [1] : vector<16x32xf32> to vector<16xf32>
    %446 = vector.shape_cast %445 : vector<16xf32> to vector<16x1xf32>
    %cst_132 = arith.constant 3.200000e+01 : f32
    %447 = vector.broadcast %cst_132 : f32 to vector<16x1xf32>
    %448 = arith.divf %446, %447 : vector<16x1xf32>
    %449 = vector.broadcast %441 : vector<16x1xf32> to vector<16x32xf32>
    %450 = arith.subf %435, %449 : vector<16x32xf32>
    %cst_133 = arith.constant 9.99999974E-6 : f32
    %451 = vector.broadcast %cst_133 : f32 to vector<16x1xf32>
    %452 = arith.addf %448, %451 : vector<16x1xf32>
    %453 = math.rsqrt %452 : vector<16x1xf32>
    %454 = vector.broadcast %453 : vector<16x1xf32> to vector<16x32xf32>
    %455 = arith.mulf %450, %454 : vector<16x32xf32>
    %456 = vector.broadcast %436 : vector<1x32xf32> to vector<16x32xf32>
    %457 = arith.mulf %455, %456 : vector<16x32xf32>
    %458 = vector.broadcast %437 : vector<1x32xf32> to vector<16x32xf32>
    %459 = arith.addf %457, %458 : vector<16x32xf32>
    %c5 = arith.constant 5 : index
    %c0_134 = arith.constant 0 : index
    %c0_135 = arith.constant 0 : index
    %460 = vector.load %arg4[%c5, %c0_134, %c0_135] : memref<6x32x128xf32, #tpu.memory_space<vmem>>, vector<1x32x128xf32>
    %461 = vector.shape_cast %460 : vector<1x32x128xf32> to vector<32x128xf32>
    %462 = vector.extract_strided_slice %461 {offsets = [0, 0], sizes = [32, 64], strides = [1, 1]} : vector<32x128xf32> to vector<32x64xf32>
    %cst_136 = arith.constant dense<0.000000e+00> : vector<16x64xf32>
    %463 = tpu.matmul %459, %462, %cst_136 {dimension_numbers = #tpu.dot_dimension_numbers<[1], [0], [0], [1], [0, 0, 1, 1], [], []>} : vector<16x32xf32>, vector<32x64xf32>, vector<16x64xf32> -> vector<16x64xf32>
    %464 = vector.extract_strided_slice %0 {offsets = [9, 0], sizes = [1, 64], strides = [1, 1]} : vector<16x128xf32> to vector<1x64xf32>
    %465 = vector.broadcast %464 : vector<1x64xf32> to vector<16x64xf32>
    %466 = arith.addf %463, %465 : vector<16x64xf32>
    %cst_137 = arith.constant 0.000000e+00 : f32
    %467 = vector.broadcast %cst_137 : f32 to vector<16x64xf32>
    %468 = arith.maximumf %466, %467 : vector<16x64xf32>
    %c0_138 = arith.constant 0 : index
    %c0_139 = arith.constant 0 : index
    %469 = vector.load %arg5[%c0_138, %c0_139] : memref<64x32xf32, #tpu.memory_space<vmem>>, vector<64x32xf32>
    %cst_140 = arith.constant dense<0.000000e+00> : vector<16x32xf32>
    %470 = tpu.matmul %468, %469, %cst_140 {dimension_numbers = #tpu.dot_dimension_numbers<[1], [0], [0], [1], [0, 0, 1, 1], [], []>} : vector<16x64xf32>, vector<64x32xf32>, vector<16x32xf32> -> vector<16x32xf32>
    %471 = vector.extract_strided_slice %0 {offsets = [10, 0], sizes = [1, 32], strides = [1, 1]} : vector<16x128xf32> to vector<1x32xf32>
    %472 = vector.broadcast %471 : vector<1x32xf32> to vector<16x32xf32>
    %473 = arith.addf %470, %472 : vector<16x32xf32>
    %474 = arith.addf %459, %473 : vector<16x32xf32>
    %475 = vector.extract_strided_slice %0 {offsets = [11, 0], sizes = [1, 32], strides = [1, 1]} : vector<16x128xf32> to vector<1x32xf32>
    %476 = vector.extract_strided_slice %0 {offsets = [12, 0], sizes = [1, 32], strides = [1, 1]} : vector<16x128xf32> to vector<1x32xf32>
    %cst_141 = arith.constant dense<0.000000e+00> : vector<16xf32>
    %477 = vector.multi_reduction <add>, %474, %cst_141 [1] : vector<16x32xf32> to vector<16xf32>
    %478 = vector.shape_cast %477 : vector<16xf32> to vector<16x1xf32>
    %cst_142 = arith.constant 3.200000e+01 : f32
    %479 = vector.broadcast %cst_142 : f32 to vector<16x1xf32>
    %480 = arith.divf %478, %479 : vector<16x1xf32>
    %481 = vector.broadcast %480 : vector<16x1xf32> to vector<16x32xf32>
    %482 = arith.subf %474, %481 : vector<16x32xf32>
    %483 = arith.mulf %482, %482 : vector<16x32xf32>
    %cst_143 = arith.constant dense<0.000000e+00> : vector<16xf32>
    %484 = vector.multi_reduction <add>, %483, %cst_143 [1] : vector<16x32xf32> to vector<16xf32>
    %485 = vector.shape_cast %484 : vector<16xf32> to vector<16x1xf32>
    %cst_144 = arith.constant 3.200000e+01 : f32
    %486 = vector.broadcast %cst_144 : f32 to vector<16x1xf32>
    %487 = arith.divf %485, %486 : vector<16x1xf32>
    %488 = vector.broadcast %480 : vector<16x1xf32> to vector<16x32xf32>
    %489 = arith.subf %474, %488 : vector<16x32xf32>
    %cst_145 = arith.constant 9.99999974E-6 : f32
    %490 = vector.broadcast %cst_145 : f32 to vector<16x1xf32>
    %491 = arith.addf %487, %490 : vector<16x1xf32>
    %492 = math.rsqrt %491 : vector<16x1xf32>
    %493 = vector.broadcast %492 : vector<16x1xf32> to vector<16x32xf32>
    %494 = arith.mulf %489, %493 : vector<16x32xf32>
    %495 = vector.broadcast %475 : vector<1x32xf32> to vector<16x32xf32>
    %496 = arith.mulf %494, %495 : vector<16x32xf32>
    %497 = vector.broadcast %476 : vector<1x32xf32> to vector<16x32xf32>
    %498 = arith.addf %496, %497 : vector<16x32xf32>
    %c0_146 = arith.constant 0 : index
    %c0_147 = arith.constant 0 : index
    %499 = vector.load %arg7[%c0_146, %c0_147] : memref<16x32xf32, #tpu.memory_space<vmem>>, vector<16x32xf32>
    tpu.vector_store %arg7[%c0_146, %c0_147], %498 {strides = array<i32>} : memref<16x32xf32, #tpu.memory_space<vmem>>, vector<16x32xf32>,
    return
  }
}

</mosaic_0001>

<bundles_post_ra>
// kernel: decoder_layer.1
= control target key start
LH: loop header
LB: loop body
LE: loop exit
PB: predicated region body
PF: predicated region fallthrough
CT: control target
= control target key end

     0   :  { %14 = vsyncpa [#allocation3], 0  ;;  %s2833_s0 = inlined_call_operand.vmem [shape: f32[16,32], index: 0, kind: input, shape index: {}]   ;;  %s2834_s1 = inlined_call_operand.vmem [shape: f32[32,32], index: 1, kind: input, shape index: {}]   ;;  %s2835_s2 = inlined_call_operand.vmem [shape: f32[16,8], index: 2, kind: input, shape index: {}]   ;;  %s2836_s3 = inlined_call_operand.vmem [shape: f32[2,16], index: 3, kind: input, shape index: {}]   ;;  %s2837_s4 = inlined_call_operand.hbm [shape: f32[6,32,128], index: 4, kind: input, shape index: {}]   ;;  %s2838_s5 = inlined_call_operand.vmem [shape: f32[64,32], index: 5, kind: input, shape index: {}]   ;;  %s2839_s6 = inlined_call_operand.vmem [shape: f32[16,128], index: 6, kind: input, shape index: {}]   ;;  %s2840_s7 = inlined_call_operand.hbm [shape: f32[16,32], index: 7, kind: output, shape index: {0}]   ;;  %s2841_s8 = inlined_call_operand.vmem [shape: f32[8,128], index: 8, kind: output, shape index: {1}]  }
   0x1   :  { %15 = vsyncpa [#allocation4], 0  ;;  %s28_s29 = sshll.u32 %s2837_s4, 4  ;;  %s2259_s30 = smov [#allocation2]   ;;  %s29_s29 = int_to_ptr.hbm [resolvable:$true] %s28_s29 }
   0x2   :  { %s30_s9 = sshll.u32 %s2259_s30, 4  ;;  %s2260_s10 = smov 128   ;;  %s31_s9 = int_to_ptr.vmem [resolvable:$true] %s30_s9 }
   0x3   :  { %s2261_s11 = smov 8  }
   0x4   :  { %36 = dma.hbm_to_vmem [thread:$0]  %s29_s29, 3072, %s31_s9, [#allocation3], %s2260_s10, %s2260_s10, %s2261_s11  }
   0x5   :  { %2255 = dma.done.wait [#allocation3], 3072  }
   0x6   :  { %2256 = vsyncadd [#allocation3], 4294964224  ;;  %v56_v0 = vld [vmem:[#allocation2 + $0x18] sm:$0xff]  ;;  %v55_v1 = vld [vmem:[#allocation2 + $0x10] sm:$0xff]  ;;  %vm58_vm0 = vcmask 261120   ;;  %s2262_s15 = smov 120  }
   0x7   :  { %77 = vmatpush.msra.mxu0 %v56_v0  ;;  %v54_v2 = vld [vmem:[#allocation2 + $0x8] sm:$0xff]  ;;  %v53_v3 = vld [vmem:[#allocation2] sm:$0xff]  ;;  %s2263_s16 = smov 96   ;;  %s2264_s17 = smov 88   ;;  %vm98_vm1 = vcmask 64512   ;;  %vm1000_vm6 = vcmask 130048  }
   0x8   :  { %v2331_v4 = vld [vmem:[%s2833_s0] sm:$0xff]  ;;  %s2265_s20 = smov 112   ;;  %s2266_s21 = smov 104   ;;  %v2381_v34 = vld [vmem:[#allocation2 + $0x28] sm:$0xff]  ;;  %vm1773_vm13 = vcmask 523264  }
   0x9   :  { %78 = vmatpush.msra.mxu0 %v55_v1  ;;  %v2338_v5 = vld [vmem:[%s2839_s6] sm:$0xff]  ;;  %s2267_s22 = smov 48   ;;  %s2268_s23 = smov 64   ;;  %v2387_v35 = vld [vmem:[%s2833_s0 + $0x8] sm:$0xff] }
   0xa   :  { %v57_v6 = vperm.slane %v2338_v5, 0  ;;  %v2359_v13 = vld [vmem:[%s2835_s2] sm:$0xff]  ;;  %s2269_s24 = smov 72   ;;  %s2270_s25 = smov 56  }
   0xb   :  { %79 = vmatpush.msra.mxu0 %v54_v2  ;;  %s2271_s26 = smov 80   ;;  %v89_v46 = vld [vmem:[#allocation2 + $0x20] sm:$0xff]  ;;  %s2272_s0 = smov 40  }
   0xd   :  { %80 = vmatpush.msra.mxu0 %v53_v3 }
   0xe   :  { %1986 = vmatmul.msk.f32.vlgmr.msra.gmra.mxu0 %vm58_vm0, %v2331_v4 }
   0xf   :  { %247 = vmatpush.msrb.mxu0 %v2381_v34 }
  0x16   :  { %1987 = vmatmul.msk.f32.gmra.mxu0 %vm58_vm0, %v2387_v35 }
  0x8b   :  { %v82_v7 = vpop.f32.mrf.mxu0 }
  0x8c   :  { %v2343_v8 = vadd.f32 %v82_v7, %v57_v6  ;;  %v91_v7 = vld [vmem:[#allocation2 + $0x30] sm:$0xff] }
  0x8e   :  { %162 = vrot.lane.b32.xlu1 %v2343_v8, %s2262_s15  ;;  %96 = vrot.lane.b32.xlu0 %v2343_v8, %s2263_s16 }
  0x93   :  { %v85_v53 = vpop.f32.mrf.mxu0 }
  0x94   :  { %v2403_v54 = vadd.f32 %v85_v53, %v57_v6 }
  0x96   :  { %164 = vrot.lane.b32.xlu0 %v2343_v8, %s2264_s17 }
 0x100   :  { %v97_v9 = vpop.permute.xlu0 %96  ;;  %v163_v11 = vpop.permute.xlu1 %162 }
 0x101   :  { %1988 = vmatpush.xpose.msk.msra.mxu3 %vm98_vm1, %v97_v9 }
 0x104   :  { %1989 = vmatmul.msk.f32.vlgmr.msra.gmra.mxu3 %vm98_vm1, %v2343_v8 }
 0x108   :  { %v165_v10 = vpop.permute.xlu0 %164 }
 0x109   :  { %1991 = vmatpush.xpose.msk.msrb.mxu3 %vm98_vm1, %v165_v10 }
 0x10c   :  { %1992 = vmatmul.msk.f32.vlgmr.msrb.gmra.mxu3 %vm98_vm1, %v163_v11 }
 0x10d   :  { %270 = vmatpush.msra.mxu3 %v89_v46 }
 0x10f   :  { %360 = vmatpush.msrb.mxu3 %v91_v7 }
 0x187   :  { %v120_v12 = vpop.f32.mrf.mxu3 }
 0x188   :  { %v123_v14 = vmul.f32 0.35355338, %v120_v12 }
 0x18a   :  { %v124_v15 = vadd.f32 %v123_v14, %v2359_v13 }
 0x18c   :  { %v125_v16 = vsel %vm98_vm1, %v124_v15, -inf }
 0x18d   :  { %126 = vmax.xlane.f32.xlu1 %v125_v16 }
 0x18f   :  { %v187_v17 = vpop.f32.mrf.mxu3 }
 0x190   :  { %v190_v18 = vmul.f32 0.35355338, %v187_v17 }
 0x192   :  { %v191_v19 = vadd.f32 %v190_v18, %v2359_v13 }
 0x194   :  { %v192_v20 = vsel %vm98_vm1, %v191_v19, -inf }
 0x195   :  { %193 = vmax.xlane.f32.xlu2 %v192_v20 }
 0x1a6   :  { %275 = vrot.lane.b32.xlu1 %v2343_v8, %s2265_s20 }
 0x1ae   :  { %366 = vrot.lane.b32.xlu1 %v2343_v8, %s2266_s21 }
 0x1b6   :  { %316 = vrot.lane.b32.xlu1 %v2343_v8, %s2267_s22 }
 0x200   :  { %v127_v21 = vpop.xlane.xlu1 %126 }
 0x201   :  { %v128_v22 = vsub.f32 %v124_v15, %v127_v21 }
 0x203   :  { %v129_v23 = vmul.f32 1.442695, %v128_v22 }
 0x205   :  { %2128 = vpow2.f32 %v129_v23  ;;  %v2434_v23 = vld [vmem:[#allocation2 + $0x38] sm:$0xff] }
 0x208   :  { %v194_v24 = vpop.xlane.xlu2 %193 }
 0x209   :  { %v195_v25 = vsub.f32 %v191_v19, %v194_v24 }
 0x20b   :  { %v2129_v26 = vpop.eup %2128  ;;  %v196_v27 = vmul.f32 1.442695, %v195_v25 }
 0x20c   :  { %v131_v28 = vsel %vm98_vm1, %v2129_v26, 0.0 }
 0x20d   :  { %2130 = vpow2.f32 %v196_v27  ;;  %132 = vadd.xlane.f32.xlu2 %v131_v28 }
 0x213   :  { %v2131_v29 = vpop.eup %2130 }
 0x214   :  { %v198_v30 = vsel %vm98_vm1, %v2131_v29, 0.0 }
 0x215   :  { %199 = vadd.xlane.f32.xlu0 %v198_v30  ;;  %v2441_v30 = vld [vmem:[%s2835_s2 + $0x8] sm:$0xff] }
 0x218   :  { %v276_v31 = vpop.permute.xlu1 %275 }
 0x220   :  { %v367_v32 = vpop.permute.xlu1 %366 }
 0x225   :  { %136 = vrot.lane.b32.xlu2 %v2343_v8, %s2268_s23 }
 0x228   :  { %v317_v33 = vpop.permute.xlu1 %316 }
 0x229   :  { %337 = vmatpush.msra.mxu1 %v317_v33  ;;  %368 = vrot.lane.b32.xlu0 %v2343_v8, %s2269_s24 }
 0x22b   :  { %451 = vmatpush.msrb.mxu1 %v2434_v23 }
 0x22d   :  { %203 = vrot.lane.b32.xlu2 %v2343_v8, %s2270_s25 }
 0x235   :  { %277 = vrot.lane.b32.xlu2 %v2343_v8, %s2271_s26 }
 0x280   :  { %v133_v36 = vpop.xlane.xlu2 %132 }
 0x281   :  { %2132 = vrcp.f32 %v133_v36 }
 0x287   :  { %v2133_v37 = vpop.eup %2132 }
 0x288   :  { %v200_v38 = vpop.xlane.xlu0 %199  ;;  %v137_v39 = vpop.permute.xlu2 %136  ;;  %v135_v40 = vmul.f32 %v2133_v37, %v2129_v26 }
 0x289   :  { %2134 = vrcp.f32 %v200_v38  ;;  %157 = vmatpush.msra.mxu2 %v137_v39 }
 0x28a   :  { %1990 = vmatmul.msk.f32.vlgmr.msra.gmra.mxu2 %vm98_vm1, %v135_v40 }
 0x28f   :  { %v2135_v41 = vpop.eup %2134 }
 0x290   :  { %v204_v42 = vpop.permute.xlu2 %203  ;;  %v202_v43 = vmul.f32 %v2135_v41, %v2131_v29 }
 0x291   :  { %224 = vmatpush.msrb.mxu2 %v204_v42 }
 0x292   :  { %1993 = vmatmul.msk.f32.vlgmr.msrb.gmra.mxu2 %vm98_vm1, %v202_v43 }
 0x298   :  { %v278_v44 = vpop.permute.xlu2 %277 }
 0x299   :  { %1996 = vmatpush.xpose.msk.msra.mxu2 %vm98_vm1, %v278_v44 }
 0x29b   :  { %v369_v45 = vpop.permute.xlu0 %368 }
 0x29c   :  { %1997 = vmatmul.msk.f32.vlgmr.msra.gmra.mxu2 %vm98_vm1, %v276_v31  ;;  %2000 = vmatpush.xpose.msk.msra.mxu0 %vm98_vm1, %v369_v45 }
 0x30d   :  { %v159_v47 = vpop.f32.mrf.mxu2 }
 0x30e   :  { %1995 = vmatmul.msk.f32.vlgmr.msra.gmra.mxu3 %vm98_vm1, %v159_v47 }
 0x315   :  { %v226_v48 = vpop.f32.mrf.mxu2 }
 0x316   :  { %1994 = vmatmul.msk.f32.vlgmr.msrb.gmra.mxu0 %vm98_vm1, %v226_v48 }
 0x31e   :  { %2001 = vmatmul.msk.f32.vlgmr.msra.gmra.mxu0 %vm98_vm1, %v367_v32 }
 0x31f   :  { %v300_v49 = vpop.f32.mrf.mxu2 }
 0x320   :  { %v303_v50 = vmul.f32 0.35355338, %v300_v49 }
 0x322   :  { %v304_v51 = vadd.f32 %v303_v50, %v2359_v13 }
 0x324   :  { %v305_v52 = vsel %vm98_vm1, %v304_v51, -inf }
 0x325   :  { %306 = vmax.xlane.f32.xlu2 %v305_v52 }
 0x33d   :  { %460 = vrot.lane.b32.xlu2 %v2403_v54, %s2263_s16 }
 0x345   :  { %407 = vrot.lane.b32.xlu2 %v2343_v8, %s2272_s0 }
 0x34d   :  { %525 = vrot.lane.b32.xlu2 %v2403_v54, %s2262_s15 }
 0x355   :  { %638 = vrot.lane.b32.xlu2 %v2403_v54, %s2265_s20 }
 0x391   :  { %v272_v24 = vpop.f32.mrf.mxu3 }
 0x393   :  { %v249_v55 = vpop.f32.mrf.mxu0 }
 0x394   :  { %v273_v26 = vadd.f32 %v272_v24, %v249_v55 }
 0x398   :  { %v307_v56 = vpop.xlane.xlu2 %306 }
 0x399   :  { %v308_v57 = vsub.f32 %v304_v51, %v307_v56 }
 0x39b   :  { %v309_v58 = vmul.f32 1.442695, %v308_v57  ;;  %v391_v59 = vpop.f32.mrf.mxu0 }
 0x39c   :  { %v394_v60 = vmul.f32 0.35355338, %v391_v59 }
 0x39d   :  { %2136 = vpow2.f32 %v309_v58 }
 0x39e   :  { %v395_v61 = vadd.f32 %v394_v60, %v2359_v13 }
 0x3a0   :  { %v461_v62 = vpop.permute.xlu2 %460  ;;  %v396_v63 = vsel %vm98_vm1, %v395_v61, -inf }
 0x3a1   :  { %397 = vmax.xlane.f32.xlu1 %v396_v63  ;;  %2004 = vmatpush.xpose.msk.msra.mxu3 %vm98_vm1, %v461_v62 }
 0x3a3   :  { %v2137_v0 = vpop.eup %2136 }
 0x3a4   :  { %v311_v1 = vsel %vm98_vm1, %v2137_v0, 0.0 }
 0x3a5   :  { %312 = vadd.xlane.f32.xlu0 %v311_v1 }
 0x3a8   :  { %v408_v2 = vpop.permute.xlu2 %407 }
 0x3a9   :  { %428 = vmatpush.msrb.mxu2 %v408_v2 }
 0x3b0   :  { %v526_v21 = vpop.permute.xlu2 %525 }
 0x3b8   :  { %v639_v22 = vpop.permute.xlu2 %638 }
 0x3ba   :  { %640 = vrot.lane.b32.xlu1 %v2403_v54, %s2271_s26 }
 0x3c2   :  { %499 = vrot.lane.b32.xlu1 %v2403_v54, %s2268_s23 }
 0x414   :  { %v398_v3 = vpop.xlane.xlu1 %397 }
 0x415   :  { %v399_v6 = vsub.f32 %v395_v61, %v398_v3  ;;  %v457_v61 = vperm.slane %v2338_v5, 1 }
 0x417   :  { %v400_v8 = vmul.f32 1.442695, %v399_v6 }
 0x418   :  { %v313_v9 = vpop.xlane.xlu0 %312 }
 0x419   :  { %2138 = vpow2.f32 %v400_v8 }
 0x41a   :  { %2140 = vrcp.f32 %v313_v9 }
 0x41f   :  { %v2139_v10 = vpop.eup %2138 }
 0x420   :  { %v2141_v11 = vpop.eup %2140  ;;  %v402_v12 = vsel %vm98_vm1, %v2139_v10, 0.0 }
 0x421   :  { %403 = vadd.xlane.f32.xlu0 %v402_v12  ;;  %v315_v13 = vmul.f32 %v2141_v11, %v2137_v0 }
 0x423   :  { %1998 = vmatmul.msk.f32.vlgmr.msra.gmra.mxu1 %vm98_vm1, %v315_v13  ;;  %v2273_v13 = vmov 32.0  }
 0x42c   :  { %v641_v14 = vpop.permute.xlu1 %640 }
 0x434   :  { %v500_v15 = vpop.permute.xlu1 %499 }
 0x435   :  { %527 = vrot.lane.b32.xlu0 %v2403_v54, %s2264_s17  ;;  %520 = vmatpush.msrb.mxu0 %v500_v15 }
 0x437   :  { %633 = vmatpush.msra.mxu0 %v89_v46 }
 0x494   :  { %v404_v16 = vpop.xlane.xlu0 %403 }
 0x495   :  { %2142 = vrcp.f32 %v404_v16 }
 0x49b   :  { %v2143_v17 = vpop.eup %2142 }
 0x49c   :  { %v406_v18 = vmul.f32 %v2143_v17, %v2139_v10 }
 0x49e   :  { %2002 = vmatmul.msk.f32.vlgmr.msrb.gmra.mxu2 %vm98_vm1, %v406_v18 }
 0x4a0   :  { %v339_v19 = vpop.f32.mrf.mxu1 }
 0x4a1   :  { %1999 = vmatmul.msk.f32.vlgmr.msrb.gmra.mxu3 %vm98_vm1, %v339_v19 }
 0x4a2   :  { %610 = vmatpush.msrb.mxu3 %v2381_v34 }
 0x4a7   :  { %v528_v20 = vpop.permute.xlu0 %527 }
 0x4a8   :  { %2007 = vmatpush.xpose.msk.msra.mxu2 %vm98_vm1, %v528_v20 }
 0x4a9   :  { %2005 = vmatmul.msk.f32.vlgmr.msra.gmra.mxu3 %vm98_vm1, %v2403_v54 }
 0x4aa   :  { %723 = vmatpush.msra.mxu3 %v91_v7 }
 0x4ab   :  { %2008 = vmatmul.msk.f32.vlgmr.msra.gmra.mxu2 %vm98_vm1, %v526_v21 }
 0x4ac   :  { %2012 = vmatpush.xpose.msk.msrb.mxu2 %vm98_vm1, %v641_v14 }
 0x4b3   :  { %2013 = vmatmul.msk.f32.vlgmr.msrb.gmra.mxu2 %vm98_vm1, %v639_v22 }
 0x521   :  { %v430_v25 = vpop.f32.mrf.mxu2 }
 0x522   :  { %2003 = vmatmul.msk.f32.vlgmr.msrb.gmra.mxu1 %vm98_vm1, %v430_v25 }
 0x524   :  { %v362_v27 = vpop.f32.mrf.mxu3 }
 0x525   :  { %v365_v28 = vadd.f32 %v362_v27, %v273_v26 }
 0x52c   :  { %v483_v29 = vpop.f32.mrf.mxu3 }
 0x52d   :  { %v486_v31 = vmul.f32 0.35355338, %v483_v29 }
 0x52e   :  { %v550_v32 = vpop.f32.mrf.mxu2 }
 0x52f   :  { %v553_v33 = vmul.f32 0.35355338, %v550_v32  ;;  %v487_v34 = vadd.f32 %v486_v31, %v2441_v30  ;;  %v884_v31 = vld [vmem:[#allocation2 + $0x58] sm:$0xff]  ;;  %v883_v32 = vld [vmem:[#allocation2 + $0x50] sm:$0xff] }
 0x531   :  { %v488_v36 = vsel %vm98_vm1, %v487_v34, -inf  ;;  %v554_v37 = vadd.f32 %v553_v33, %v2441_v30  ;;  %v882_v33 = vld [vmem:[#allocation2 + $0x48] sm:$0xff] }
 0x532   :  { %489 = vmax.xlane.f32.xlu2 %v488_v36 }
 0x533   :  { %v555_v38 = vsel %vm98_vm1, %v554_v37, -inf }
 0x534   :  { %556 = vmax.xlane.f32.xlu1 %v555_v38 }
 0x536   :  { %v663_v39 = vpop.f32.mrf.mxu2 }
 0x537   :  { %v666_v40 = vmul.f32 0.35355338, %v663_v39 }
 0x539   :  { %v667_v41 = vadd.f32 %v666_v40, %v2441_v30 }
 0x53b   :  { %v668_v42 = vsel %vm98_vm1, %v667_v41, -inf }
 0x53c   :  { %669 = vmax.xlane.f32.xlu2 %v668_v42 }
 0x54d   :  { %731 = vrot.lane.b32.xlu1 %v2403_v54, %s2269_s24 }
 0x59f   :  { %v453_v59 = vpop.f32.mrf.mxu1 }
 0x5a0   :  { %v456_v60 = vadd.f32 %v453_v59, %v365_v28 }
 0x5a2   :  { %v458_v62 = vadd.f32 %v457_v61, %v456_v60 }
 0x5a4   :  { %v821_v63 = vadd.f32 %v458_v62, %v2331_v4 }
 0x5a5   :  { %v490_v43 = vpop.xlane.xlu2 %489 }
 0x5a6   :  { %v491_v44 = vsub.f32 %v487_v34, %v490_v43  ;;  %v823_v0 = vsel %vm58_vm0, %v821_v63, 0.0  ;;  %v881_v34 = vld [vmem:[#allocation2 + $0x40] sm:$0xff] }
 0x5a7   :  { %v557_v45 = vpop.xlane.xlu1 %556 }
 0x5a8   :  { %v492_v46 = vmul.f32 1.442695, %v491_v44  ;;  %v558_v47 = vsub.f32 %v554_v37, %v557_v45  ;;  %v874_v45 = vperm.slane %v2338_v5, 2 }
 0x5aa   :  { %2144 = vpow2.f32 %v492_v46  ;;  %v559_v48 = vmul.f32 1.442695, %v558_v47 }
 0x5ac   :  { %2146 = vpow2.f32 %v559_v48  ;;  %v877_v48 = vperm.slane %v2338_v5, 3 }
 0x5af   :  { %v670_v49 = vpop.xlane.xlu2 %669 }
 0x5b0   :  { %v2145_v50 = vpop.eup %2144  ;;  %v671_v51 = vsub.f32 %v667_v41, %v670_v49 }
 0x5b1   :  { %v494_v52 = vsel %vm98_vm1, %v2145_v50, 0.0 }
 0x5b2   :  { %v672_v53 = vmul.f32 1.442695, %v671_v51  ;;  %495 = vadd.xlane.f32.xlu0 %v494_v52  ;;  %v2147_v55 = vpop.eup %2146  ;;  %v889_v51 = vld [vmem:[#allocation2 + $0x78] sm:$0xff]  ;;  %v888_v52 = vld [vmem:[#allocation2 + $0x70] sm:$0xff] }
 0x5b3   :  { %v561_v56 = vsel %vm98_vm1, %v2147_v55, 0.0 }
 0x5b4   :  { %2148 = vpow2.f32 %v672_v53  ;;  %v887_v53 = vld [vmem:[#allocation2 + $0x68] sm:$0xff] }
 0x5ba   :  { %v2149_v57 = vpop.eup %2148  ;;  %562 = vadd.xlane.f32.xlu0 %v561_v56  ;;  %v49_v56 = vld [vmem:[%s2834_s1] sm:$0xff] }
 0x5bb   :  { %v674_v58 = vsel %vm98_vm1, %v2149_v57, 0.0 }
 0x5bc   :  { %675 = vadd.xlane.f32.xlu2 %v674_v58 }
 0x5bf   :  { %v732_v6 = vpop.permute.xlu1 %731 }
 0x5ce   :  { %566 = vrot.lane.b32.xlu0 %v2403_v54, %s2270_s25  ;;  %s1969_s25 = sshll.u32 %s2840_s7, 4  ;;  %s1970_s25 = int_to_ptr.hbm [resolvable:$true] %s1969_s25 }
 0x5d4   :  { %679 = vrot.lane.b32.xlu2 %v2403_v54, %s2267_s22 }
 0x5dc   :  { %729 = vrot.lane.b32.xlu2 %v2403_v54, %s2266_s21 }
 0x5f8   :  { %824 = vadd.xlane.f32.xlu0 %v823_v0 }
 0x60c   :  { %770 = vrot.lane.b32.xlu0 %v2403_v54, %s2272_s0 }
 0x625   :  { %v496_v1 = vpop.xlane.xlu0 %495 }
 0x626   :  { %2150 = vrcp.f32 %v496_v1 }
 0x62c   :  { %v2151_v2 = vpop.eup %2150 }
 0x62d   :  { %v498_v3 = vmul.f32 %v2151_v2, %v2145_v50  ;;  %v563_v7 = vpop.xlane.xlu0 %562 }
 0x62e   :  { %2152 = vrcp.f32 %v563_v7 }
 0x62f   :  { %2006 = vmatmul.msk.f32.vlgmr.msrb.gmra.mxu0 %vm98_vm1, %v498_v3  ;;  %v676_v8 = vpop.xlane.xlu2 %675 }
 0x630   :  { %2016 = vmatpush.xpose.msk.msrb.mxu0 %vm98_vm1, %v732_v6  ;;  %2154 = vrcp.f32 %v676_v8  ;;  %v2504_v6 = vperm.slane %v2338_v5, 5 }
 0x631   :  { %2156 = vrcp.f32 %v2273_v13  ;;  %v895_v13 = vperm.slane %v2338_v5, 4 }
 0x634   :  { %v2153_v9 = vpop.eup %2152 }
 0x635   :  { %v565_v4 = vmul.f32 %v2153_v9, %v2147_v55  ;;  %v886_v55 = vld [vmem:[#allocation2 + $0x60] sm:$0xff] }
 0x636   :  { %v2155_v54 = vpop.eup %2154 }
 0x637   :  { %v680_v11 = vpop.permute.xlu2 %679  ;;  %v678_v12 = vmul.f32 %v2155_v54, %v2149_v57  ;;  %v2157_v14 = vpop.eup %2156  ;;  %v50_v57 = vld [vmem:[%s2834_s1 + $0x8] sm:$0xff] }
 0x638   :  { %v830_v15 = vmul.f32 32.0, %v2157_v14  ;;  %vm834_vm2 = vweird.f32 %v2157_v14 }
 0x63a   :  { %v831_v16 = vsub.f32 1.0, %v830_v15 }
 0x63c   :  { %v832_v17 = vmul.f32 %v2157_v14, %v831_v16 }
 0x63e   :  { %v833_v18 = vadd.f32 %v2157_v14, %v832_v17 }
 0x63f   :  { %v730_v27 = vpop.permute.xlu2 %729 }
 0x640   :  { %v567_v10 = vpop.permute.xlu0 %566  ;;  %v2472_v19 = vsel %vm834_vm2, %v2157_v14, %v833_v18 }
 0x641   :  { %587 = vmatpush.msra.mxu1 %v567_v10 }
 0x642   :  { %2009 = vmatmul.msk.f32.vlgmr.msra.gmra.mxu1 %vm98_vm1, %v565_v4 }
 0x643   :  { %700 = vmatpush.msrb.mxu1 %v680_v11 }
 0x645   :  { %814 = vmatpush.msra.mxu1 %v2434_v23 }
 0x64a   :  { %2014 = vmatmul.msk.f32.vlgmr.msrb.gmra.mxu1 %vm98_vm1, %v678_v12 }
 0x66b   :  { %v825_v20 = vpop.xlane.xlu0 %824 }
 0x66c   :  { %v836_v21 = vmul.f32 %v2472_v19, %v825_v20 }
 0x66e   :  { %v838_v22 = vsub.f32 %v821_v63, %v836_v21 }
 0x670   :  { %v840_v24 = vmul.f32 %v838_v22, %v838_v22 }
 0x672   :  { %v842_v23 = vsel %vm58_vm0, %v840_v24, 0.0 }
 0x673   :  { %843 = vadd.xlane.f32.xlu1 %v842_v23  ;;  %v2538_v23 = vld [vmem:[%s2836_s3] sm:$0x3] }
 0x67e   :  { %v771_v25 = vpop.permute.xlu0 %770 }
 0x67f   :  { %791 = vmatpush.msra.mxu2 %v771_v25  ;;  %v2541_v25 = vperm.slane %v2538_v23, 0 }
 0x6ac   :  { %v522_v26 = vpop.f32.mrf.mxu0 }
 0x6ad   :  { %2011 = vmatmul.msk.f32.vlgmr.msra.gmra.mxu0 %vm98_vm1, %v522_v26 }
 0x6ae   :  { %950 = vmatpush.msra.mxu0 %v889_v51 }
 0x6b0   :  { %951 = vmatpush.msra.mxu0 %v888_v52 }
 0x6b2   :  { %952 = vmatpush.msra.mxu0 %v887_v53 }
 0x6b4   :  { %953 = vmatpush.msra.mxu0 %v886_v55 }
 0x6b5   :  { %2017 = vmatmul.msk.f32.vlgmr.msrb.gmra.mxu0 %vm98_vm1, %v730_v27 }
 0x6bd   :  { %2022 = vmatmul.msk.f32.vlgmr.msra.gmra.mxu0 %vm58_vm0, %v49_v56 }
 0x6bf   :  { %v589_v28 = vpop.f32.mrf.mxu1 }
 0x6c0   :  { %2010 = vmatmul.msk.f32.vlgmr.msrb.gmra.mxu3 %vm98_vm1, %v589_v28 }
 0x6c1   :  { %914 = vmatpush.msrb.mxu3 %v884_v31 }
 0x6c3   :  { %915 = vmatpush.msrb.mxu3 %v883_v32 }
 0x6c5   :  { %916 = vmatpush.msrb.mxu3 %v882_v33  ;;  %2023 = vmatmul.msk.f32.gmra.mxu0 %vm58_vm0, %v50_v57 }
 0x6c7   :  { %v702_v29 = vpop.f32.mrf.mxu1  ;;  %917 = vmatpush.msrb.mxu3 %v881_v34 }
 0x6c8   :  { %2015 = vmatmul.msk.f32.vlgmr.msra.gmra.mxu3 %vm98_vm1, %v702_v29 }
 0x6e6   :  { %v844_v36 = vpop.xlane.xlu1 %843 }
 0x6e7   :  { %v848_v37 = vmul.f32 %v844_v36, %v2472_v19 }
 0x6e9   :  { %v850_v38 = vadd.f32 1e-05, %v848_v37 }
 0x6eb   :  { %2158 = vrsqrt.f32 %v850_v38  ;;  %vm858_vm4 = vweird.f32 %v850_v38 }
 0x6f1   :  { %v2159_v39 = vpop.eup %2158 }
 0x6f2   :  { %v853_v40 = vmul.f32 %v2159_v39, %v850_v38  ;;  %vm859_vm3 = vweird.f32 %v2159_v39 }
 0x6f3   :  { %vm860_vm5 = vmor %vm858_vm4, %vm859_vm3 }
 0x6f4   :  { %v854_v41 = vmul.f32 %v2159_v39, %v853_v40 }
 0x6f6   :  { %v855_v42 = vmul.f32 0.5, %v854_v41 }
 0x6f8   :  { %v856_v43 = vsub.f32 1.5, %v855_v42 }
 0x6fa   :  { %v857_v44 = vmul.f32 %v2159_v39, %v856_v43 }
 0x6fc   :  { %v861_v46 = vsel %vm860_vm5, %v2159_v39, %v857_v44  ;;  %vm1771_vm5 = vcmask 392192  }
 0x6fd   :  { %v872_v47 = vmul.f32 %v861_v46, %v838_v22 }
 0x6ff   :  { %v875_v49 = vmul.f32 %v874_v45, %v872_v47 }
 0x701   :  { %v2487_v50 = vadd.f32 %v877_v48, %v875_v49 }
 0x703   :  { %2020 = vmatmul.msk.f32.vlgmr.msrb.gmra.mxu3 %vm58_vm0, %v2487_v50 }
 0x72a   :  { %v635_v58 = vpop.f32.mrf.mxu0 }
 0x732   :  { %v754_v59 = vpop.f32.mrf.mxu0 }
 0x733   :  { %v757_v60 = vmul.f32 0.35355338, %v754_v59 }
 0x735   :  { %v758_v62 = vadd.f32 %v757_v60, %v2441_v30 }
 0x737   :  { %v759_v63 = vsel %vm98_vm1, %v758_v62, -inf }
 0x738   :  { %760 = vmax.xlane.f32.xlu2 %v759_v63 }
 0x73a   :  { %v955_v7 = vpop.f32.mrf.mxu0 }
 0x73b   :  { %v2507_v8 = vadd.f32 %v955_v7, %v2504_v6 }
 0x742   :  { %v958_v9 = vpop.f32.mrf.mxu0 }
 0x743   :  { %v612_v0 = vpop.f32.mrf.mxu3  ;;  %v2512_v30 = vadd.f32 %v958_v9, %v2504_v6 }
 0x744   :  { %v636_v1 = vadd.f32 %v635_v58, %v612_v0 }
 0x745   :  { %1045 = vrot.lane.b32.xlu1 %v2512_v30, %s2262_s15  ;;  %2026 = vmatpush.xpose.msk.msrb.mxu2 %vm98_vm1, %v2512_v30  ;;  %v2549_v36 = vpack.i.bf16 %v2507_v8, %v2512_v30 }
 0x749   :  { %2027 = vmatpush.xpose.msk.msrb.mxu2 %vm98_vm1, %v2507_v8 }
 0x74b   :  { %v725_v2 = vpop.f32.mrf.mxu3 }
 0x74c   :  { %v2501_v3 = vadd.f32 %v725_v2, %v636_v1 }
 0x750   :  { %1043 = vrot.lane.b32.xlu2 %v2507_v8, %s2262_s15 }
 0x786   :  { %v919_v14 = vpop.f32.mrf.mxu3 }
 0x787   :  { %v2524_v15 = vadd.f32 %v919_v14, %v895_v13  ;;  %v2585_v14 = vld [vmem:[#allocation2 + $0x80] sm:$0xff] }
 0x7ab   :  { %v761_v4 = vpop.xlane.xlu2 %760 }
 0x7ac   :  { %v762_v10 = vsub.f32 %v758_v62, %v761_v4 }
 0x7ae   :  { %v763_v11 = vmul.f32 1.442695, %v762_v10 }
 0x7b0   :  { %2160 = vpow2.f32 %v763_v11 }
 0x7b3   :  { %v1044_v21 = vpop.permute.xlu2 %1043 }
 0x7b6   :  { %v2161_v54 = vpop.eup %2160 }
 0x7b7   :  { %v765_v12 = vsel %vm98_vm1, %v2161_v54, 0.0  ;;  %v1046_v20 = vpop.permute.xlu1 %1045 }
 0x7b8   :  { %766 = vadd.xlane.f32.xlu0 %v765_v12 }
 0x7cc   :  { %1041 = vrot.lane.b32.xlu0 %v2524_v15, %s2262_s15 }
 0x82b   :  { %v767_v16 = vpop.xlane.xlu0 %766 }
 0x82c   :  { %2162 = vrcp.f32 %v767_v16 }
 0x832   :  { %v2163_v17 = vpop.eup %2162 }
 0x833   :  { %v769_v18 = vmul.f32 %v2163_v17, %v2161_v54 }
 0x835   :  { %2018 = vmatmul.msk.f32.vlgmr.msra.gmra.mxu2 %vm98_vm1, %v769_v18 }
 0x836   :  { %2030 = vmatpush.xpose.msk.msra.mxu2 %vm98_vm1, %v1046_v20 }
 0x83a   :  { %2031 = vmatpush.xpose.msk.msra.mxu2 %vm98_vm1, %v1044_v21 }
 0x83d   :  { %2028 = vmatmul.msk.f32.vlgmr.msrb.gmra.mxu2 %vm98_vm1, %v2524_v15 }
 0x83e   :  { %v1042_v22 = vpop.permute.xlu0 %1041  ;;  %1156 = vmatpush.msrb.mxu2 %v2585_v14 }
 0x845   :  { %2032 = vmatmul.msk.f32.vlgmr.msra.gmra.mxu2 %vm98_vm1, %v1042_v22 }
 0x8b8   :  { %v793_v24 = vpop.f32.mrf.mxu2 }
 0x8b9   :  { %2019 = vmatmul.msk.f32.vlgmr.msra.gmra.mxu1 %vm98_vm1, %v793_v24  ;;  %v2591_v24 = vld [vmem:[#allocation2 + $0x88] sm:$0xff] }
 0x8ba   :  { %1133 = vmatpush.msra.mxu3 %v2591_v24 }
 0x8c0   :  { %v994_v26 = vpop.f32.mrf.mxu2 }
 0x8c1   :  { %v997_v27 = vmul.f32 0.35355338, %v994_v26 }
 0x8c3   :  { %v999_v28 = vadd.f32 %v2541_v25, %v997_v27 }
 0x8c5   :  { %v1001_v29 = vsel %vm1000_vm6, %v999_v28, -inf }
 0x8c6   :  { %1002 = vmax.xlane.f32.xlu0 %v1001_v29 }
 0x8c8   :  { %v1070_v31 = vpop.f32.mrf.mxu2 }
 0x8c9   :  { %v1073_v32 = vmul.f32 0.35355338, %v1070_v31 }
 0x8cb   :  { %v1074_v33 = vadd.f32 %v1073_v32, %v2541_v25 }
 0x8cd   :  { %v1075_v34 = vsel %vm1000_vm6, %v1074_v33, -inf }
 0x8ce   :  { %1076 = vmax.xlane.f32.xlu2 %v1075_v34 }
 0x8da   :  { %2089 = vrot.lane.b32.xlu0 %v2549_v36, %s2263_s16 }
 0x8e2   :  { %1163 = vrot.lane.b32.xlu0 %v2507_v8, %s2265_s20 }
 0x8ea   :  { %1161 = vrot.lane.b32.xlu0 %v2524_v15, %s2265_s20 }
 0x936   :  { %v816_v53 = vpop.f32.mrf.mxu1 }
 0x937   :  { %v819_v55 = vadd.f32 %v816_v53, %v2501_v3 }
 0x939   :  { %v1003_v37 = vpop.xlane.xlu0 %1002  ;;  %v820_v56 = vadd.f32 %v819_v55, %v457_v61 }
 0x93a   :  { %v1004_v38 = vsub.f32 %v999_v28, %v1003_v37 }
 0x93b   :  { %v822_v57 = vadd.f32 %v820_v56, %v2387_v35 }
 0x93c   :  { %v1005_v39 = vmul.f32 1.442695, %v1004_v38 }
 0x93d   :  { %v826_v58 = vsel %vm58_vm0, %v822_v57, 0.0 }
 0x93e   :  { %2164 = vpow2.f32 %v1005_v39 }
 0x941   :  { %v1077_v40 = vpop.xlane.xlu2 %1076 }
 0x942   :  { %v1078_v41 = vsub.f32 %v1074_v33, %v1077_v40 }
 0x944   :  { %v2165_v42 = vpop.eup %2164  ;;  %v1079_v43 = vmul.f32 1.442695, %v1078_v41 }
 0x945   :  { %v1007_v44 = vsel %vm1000_vm6, %v2165_v42, 0.0 }
 0x946   :  { %2166 = vpow2.f32 %v1079_v43  ;;  %1008 = vadd.xlane.f32.xlu1 %v1007_v44 }
 0x94c   :  { %v2167_v46 = vpop.eup %2166  ;;  %v2090_v47 = vpop.permute.xlu0 %2089 }
 0x94d   :  { %v2091_v49 = vunpack.i.l.bf16 %v2090_v47  ;;  %v1081_v51 = vsel %vm1000_vm6, %v2167_v46, 0.0  ;;  %v2092_v52 = vunpack.i.h.bf16 %v2090_v47 }
 0x94e   :  { %1082 = vadd.xlane.f32.xlu2 %v1081_v51  ;;  %v52_v51 = vld [vmem:[%s2834_s1 + $0x18] sm:$0xff] }
 0x94f   :  { %1035 = vmatpush.msrb.mxu1 %v2091_v49 }
 0x951   :  { %1036 = vmatpush.msrb.mxu1 %v2092_v52 }
 0x954   :  { %v1164_v3 = vpop.permute.xlu0 %1163 }
 0x95c   :  { %v1162_v9 = vpop.permute.xlu0 %1161 }
 0x95f   :  { %2094 = vrot.lane.b32.xlu1 %v2549_v36, %s2264_s17 }
 0x966   :  { %1165 = vrot.lane.b32.xlu2 %v2512_v30, %s2265_s20 }
 0x989   :  { %827 = vadd.xlane.f32.xlu1 %v826_v58 }
 0x9b9   :  { %v1009_v59 = vpop.xlane.xlu1 %1008 }
 0x9ba   :  { %2168 = vrcp.f32 %v1009_v59 }
 0x9c0   :  { %v2169_v60 = vpop.eup %2168 }
 0x9c1   :  { %v2568_v62 = vmul.f32 %v2169_v60, %v2165_v42  ;;  %v1083_v63 = vpop.xlane.xlu2 %1082 }
 0x9c2   :  { %2170 = vrcp.f32 %v1083_v63 }
 0x9c3   :  { %2029 = vmatmul.msk.f32.vlgmr.msrb.gmra.mxu1 %vm1000_vm6, %v2568_v62 }
 0x9c8   :  { %v2171_v1 = vpop.eup %2170 }
 0x9c9   :  { %v2572_v35 = vmul.f32 %v2171_v1, %v2167_v46  ;;  %v1166_v7 = vpop.permute.xlu2 %1165 }
 0x9d1   :  { %v2095_v0 = vpop.permute.xlu1 %2094 }
 0x9d2   :  { %v2096_v2 = vunpack.i.l.bf16 %v2095_v0  ;;  %v2097_v61 = vunpack.i.h.bf16 %v2095_v0 }
 0x9d4   :  { %1109 = vmatpush.msra.mxu1 %v2096_v2 }
 0x9d6   :  { %1110 = vmatpush.msra.mxu1 %v2097_v61 }
 0x9d7   :  { %2033 = vmatmul.msk.f32.vlgmr.msra.gmra.mxu1 %vm1000_vm6, %v2572_v35 }
 0x9d8   :  { %2036 = vmatpush.xpose.msk.msrb.mxu1 %vm98_vm1, %v1166_v7 }
 0x9dc   :  { %2037 = vmatpush.xpose.msk.msrb.mxu1 %vm98_vm1, %v1164_v3 }
 0x9df   :  { %2038 = vmatmul.msk.f32.vlgmr.msrb.gmra.mxu1 %vm98_vm1, %v1162_v9 }
 0x9fc   :  { %v828_v4 = vpop.xlane.xlu1 %827 }
 0x9fd   :  { %v837_v10 = vmul.f32 %v2472_v19, %v828_v4 }
 0x9ff   :  { %v839_v11 = vsub.f32 %v822_v57, %v837_v10 }
 0xa01   :  { %v841_v54 = vmul.f32 %v839_v11, %v839_v11 }
 0xa03   :  { %v845_v12 = vsel %vm58_vm0, %v841_v54, 0.0 }
 0xa04   :  { %846 = vadd.xlane.f32.xlu0 %v845_v12 }
 0xa18   :  { %1263 = vrot.lane.b32.xlu0 %v2512_v30, %s2266_s21 }
 0xa20   :  { %1259 = vrot.lane.b32.xlu0 %v2524_v15, %s2266_s21 }
 0xa40   :  { %v1038_v16 = vpop.f32.mrf.mxu1 }
 0xa41   :  { %2035 = vmatmul.msk.f32.vlgmr.msrb.gmra.mxu2 %vm98_vm1, %v1038_v16  ;;  %v2650_v16 = vperm.slane %v2538_v23, 1 }
 0xa54   :  { %v1112_v17 = vpop.f32.mrf.mxu1 }
 0xa5c   :  { %v1190_v18 = vpop.f32.mrf.mxu1 }
 0xa5d   :  { %v1193_v20 = vmul.f32 0.35355338, %v1190_v18 }
 0xa5f   :  { %v1194_v21 = vadd.f32 %v1193_v20, %v2541_v25 }
 0xa61   :  { %v1195_v22 = vsel %vm1000_vm6, %v1194_v21, -inf }
 0xa62   :  { %1196 = vmax.xlane.f32.xlu2 %v1195_v22 }
 0xa77   :  { %v847_v30 = vpop.xlane.xlu0 %846 }
 0xa78   :  { %v849_v15 = vmul.f32 %v847_v30, %v2472_v19 }
 0xa7a   :  { %v851_v26 = vadd.f32 1e-05, %v849_v15  ;;  %2099 = vrot.lane.b32.xlu2 %v2549_v36, %s2271_s26 }
 0xa7c   :  { %2172 = vrsqrt.f32 %v851_v26  ;;  %vm868_vm8 = vweird.f32 %v851_v26 }
 0xa82   :  { %v2173_v27 = vpop.eup %2172 }
 0xa83   :  { %v863_v28 = vmul.f32 %v2173_v27, %v851_v26  ;;  %vm869_vm7 = vweird.f32 %v2173_v27 }
 0xa84   :  { %vm870_vm9 = vmor %vm868_vm8, %vm869_vm7 }
 0xa85   :  { %v864_v29 = vmul.f32 %v2173_v27, %v863_v28 }
 0xa87   :  { %v865_v31 = vmul.f32 0.5, %v864_v29 }
 0xa89   :  { %v866_v32 = vsub.f32 1.5, %v865_v31 }
 0xa8a   :  { %v1264_v33 = vpop.permute.xlu0 %1263 }
 0xa8b   :  { %v867_v34 = vmul.f32 %v2173_v27, %v866_v32  ;;  %2041 = vmatpush.xpose.msk.msra.mxu1 %vm98_vm1, %v1264_v33 }
 0xa8d   :  { %v871_v37 = vsel %vm870_vm9, %v2173_v27, %v867_v34  ;;  %vm1775_vm9 = vcmask 654336  }
 0xa8e   :  { %v873_v38 = vmul.f32 %v871_v37, %v839_v11 }
 0xa90   :  { %v876_v39 = vmul.f32 %v874_v45, %v873_v38 }
 0xa92   :  { %v2602_v40 = vadd.f32 %v877_v48, %v876_v39  ;;  %v51_v48 = vld [vmem:[%s2834_s1 + $0x10] sm:$0xff]  ;;  %v1260_v57 = vpop.permute.xlu0 %1259 }
 0xa93   :  { %2024 = vmatmul.msk.f32.gmra.mxu0 %vm58_vm0, %v51_v48 }
 0xa94   :  { %2021 = vmatmul.msk.f32.gmra.mxu3 %vm58_vm0, %v2602_v40 }
 0xa9b   :  { %2025 = vmatmul.msk.f32.gmra.mxu0 %vm58_vm0, %v52_v51 }
 0xa9c   :  { %2034 = vmatmul.msk.f32.vlgmr.msra.gmra.mxu3 %vm98_vm1, %v1112_v17 }
 0xac4   :  { %v2645_v5 = vpop.f32.mrf.mxu2 }
 0xad5   :  { %v1197_v41 = vpop.xlane.xlu2 %1196 }
 0xad6   :  { %v1198_v42 = vsub.f32 %v1194_v21, %v1197_v41 }
 0xad8   :  { %v1199_v43 = vmul.f32 1.442695, %v1198_v42 }
 0xada   :  { %2174 = vpow2.f32 %v1199_v43 }
 0xadd   :  { %v2100_v44 = vpop.permute.xlu2 %2099 }
 0xade   :  { %v2101_v46 = vunpack.i.l.bf16 %v2100_v44  ;;  %v2102_v49 = vunpack.i.h.bf16 %v2100_v44 }
 0xae0   :  { %v2175_v47 = vpop.eup %2174  ;;  %1229 = vmatpush.msrb.mxu3 %v2101_v46 }
 0xae1   :  { %v1201_v45 = vsel %vm1000_vm6, %v2175_v47, 0.0 }
 0xae2   :  { %1202 = vadd.xlane.f32.xlu1 %v1201_v45  ;;  %1230 = vmatpush.msrb.mxu3 %v2102_v49  ;;  %v2680_v45 = vld [vmem:[#allocation2 + $0x98] sm:$0xff] }
 0xae3   :  { %1351 = vmatpush.msrb.mxu0 %v2680_v45 }
 0xafb   :  { %1261 = vrot.lane.b32.xlu1 %v2507_v8, %s2266_s21  ;;  %v893_v8 = vld [vmem:[#allocation2 + $0x90] sm:$0xff] }
 0xafc   :  { %1253 = vmatpush.msra.mxu2 %v893_v8 }
 0xb10   :  { %v961_v58 = vpop.f32.mrf.mxu0 }
 0xb11   :  { %v962_v59 = vadd.f32 %v961_v58, %v2504_v6 }
 0xb17   :  { %v922_v1 = vpop.f32.mrf.mxu3 }
 0xb18   :  { %v964_v60 = vpop.f32.mrf.mxu0 }
 0xb19   :  { %v965_v63 = vadd.f32 %v964_v60, %v2504_v6  ;;  %v923_v6 = vadd.f32 %v922_v1, %v895_v13 }
 0xb1b   :  { %v2626_v0 = vpack.i.bf16 %v962_v59, %v965_v63  ;;  %2046 = vmatpush.xpose.msk.msrb.mxu2 %vm98_vm1, %v965_v63 }
 0xb1d   :  { %2104 = vrot.lane.b32.xlu0 %v2626_v0, %s2263_s16 }
 0xb1f   :  { %2047 = vmatpush.xpose.msk.msrb.mxu2 %vm98_vm1, %v962_v59  ;;  %v2632_v2 = vpop.f32.mrf.mxu3 }
 0xb55   :  { %v1203_v52 = vpop.xlane.xlu1 %1202 }
 0xb56   :  { %2176 = vrcp.f32 %v1203_v52 }
 0xb5c   :  { %v2177_v53 = vpop.eup %2176 }
 0xb5d   :  { %v2618_v55 = vmul.f32 %v2177_v53, %v2175_v47 }
 0xb5f   :  { %2039 = vmatmul.msk.f32.vlgmr.msrb.gmra.mxu3 %vm1000_vm6, %v2618_v55 }
 0xb6d   :  { %v1262_v56 = vpop.permute.xlu1 %1261 }
 0xb6e   :  { %2042 = vmatpush.xpose.msk.msra.mxu1 %vm98_vm1, %v1262_v56 }
 0xb71   :  { %2043 = vmatmul.msk.f32.vlgmr.msra.gmra.mxu1 %vm98_vm1, %v1260_v57 }
 0xb8f   :  { %v2105_v10 = vpop.permute.xlu0 %2104 }
 0xb90   :  { %v2107_v11 = vunpack.i.h.bf16 %v2105_v10  ;;  %v2106_v54 = vunpack.i.l.bf16 %v2105_v10  ;;  %v2702_v10 = vld [vmem:[%s2839_s6] sm:$0xff] }
 0xb92   :  { %1425 = vmatpush.msrb.mxu1 %v2106_v54 }
 0xb94   :  { %1426 = vmatpush.msrb.mxu1 %v2107_v11  ;;  %v1357_v11 = vperm.slane %v2702_v10, 6 }
 0xb96   :  { %1546 = vmatpush.msra.mxu1 %v2585_v14 }
 0xbe2   :  { %v1232_v3 = vpop.f32.mrf.mxu3 }
 0xbe3   :  { %2040 = vmatmul.msk.f32.vlgmr.msra.gmra.mxu2 %vm98_vm1, %v1232_v3 }
 0xbe4   :  { %1523 = vmatpush.msra.mxu2 %v2591_v24 }
 0xbeb   :  { %2048 = vmatmul.msk.f32.vlgmr.msrb.gmra.mxu2 %vm98_vm1, %v923_v6 }
 0xbec   :  { %1643 = vmatpush.msrb.mxu2 %v893_v8 }
 0xbee   :  { %v1288_v61 = vpop.f32.mrf.mxu1 }
 0xbef   :  { %v1291_v7 = vmul.f32 0.35355338, %v1288_v61 }
 0xbf1   :  { %v1292_v9 = vadd.f32 %v1291_v7, %v2541_v25 }
 0xbf3   :  { %v1293_v4 = vsel %vm1000_vm6, %v1292_v9, -inf }
 0xbf4   :  { %1294 = vmax.xlane.f32.xlu0 %v1293_v4 }
 0xc08   :  { %1433 = vrot.lane.b32.xlu0 %v962_v59, %s2262_s15 }
 0xc10   :  { %1553 = vrot.lane.b32.xlu0 %v962_v59, %s2265_s20 }
 0xc18   :  { %1651 = vrot.lane.b32.xlu0 %v962_v59, %s2266_s21 }
 0xc66   :  { %v2647_v13 = vpop.f32.mrf.mxu2 }
 0xc67   :  { %v1295_v25 = vpop.xlane.xlu0 %1294 }
 0xc68   :  { %v1296_v12 = vsub.f32 %v1292_v9, %v1295_v25  ;;  %v1159_v9 = vadd.f32 %v2645_v5, %v2632_v2 }
 0xc6a   :  { %v1297_v17 = vmul.f32 1.442695, %v1296_v12  ;;  %v1258_v4 = vadd.f32 %v2647_v13, %v1159_v9 }
 0xc6c   :  { %2178 = vpow2.f32 %v1297_v17 }
 0xc6e   :  { %v1385_v18 = vpop.f32.mrf.mxu2 }
 0xc6f   :  { %v1388_v20 = vmul.f32 0.35355338, %v1385_v18 }
 0xc71   :  { %v1390_v14 = vadd.f32 %v2650_v16, %v1388_v20 }
 0xc72   :  { %v2179_v22 = vpop.eup %2178 }
 0xc73   :  { %v1391_v21 = vsel %vm1000_vm6, %v1390_v14, -inf  ;;  %v1299_v24 = vsel %vm1000_vm6, %v2179_v22, 0.0 }
 0xc74   :  { %1392 = vmax.xlane.f32.xlu2 %v1391_v21 }
 0xc7a   :  { %v1434_v31 = vpop.permute.xlu0 %1433 }
 0xc7c   :  { %1300 = vadd.xlane.f32.xlu2 %v1299_v24 }
 0xc82   :  { %v1554_v34 = vpop.permute.xlu0 %1553 }
 0xc94   :  { %1435 = vrot.lane.b32.xlu2 %v965_v63, %s2262_s15 }
 0xc9c   :  { %1555 = vrot.lane.b32.xlu2 %v965_v63, %s2265_s20 }
 0xca4   :  { %1653 = vrot.lane.b32.xlu2 %v965_v63, %s2266_s21 }
 0xce7   :  { %v1393_v23 = vpop.xlane.xlu2 %1392 }
 0xce8   :  { %v1394_v30 = vsub.f32 %v1390_v14, %v1393_v23 }
 0xcea   :  { %v1395_v15 = vmul.f32 1.442695, %v1394_v30 }
 0xcec   :  { %2180 = vpow2.f32 %v1395_v15 }
 0xcef   :  { %v1301_v28 = vpop.xlane.xlu2 %1300 }
 0xcf2   :  { %v2181_v26 = vpop.eup %2180 }
 0xcf3   :  { %v1397_v27 = vsel %vm1000_vm6, %v2181_v26, 0.0 }
 0xcf4   :  { %1398 = vadd.xlane.f32.xlu1 %v1397_v27 }
 0xcf7   :  { %v1436_v29 = vpop.permute.xlu2 %1435 }
 0xcff   :  { %v1556_v32 = vpop.permute.xlu2 %1555 }
 0xd07   :  { %v1654_v39 = vpop.permute.xlu2 %1653 }
 0xd0d   :  { %2109 = vrot.lane.b32.xlu1 %v2549_v36, %s2269_s24  ;;  %v1652_v36 = vpop.permute.xlu0 %1651 }
 0xd15   :  { %1431 = vrot.lane.b32.xlu1 %v923_v6, %s2262_s15 }
 0xd1d   :  { %1551 = vrot.lane.b32.xlu1 %v923_v6, %s2265_s20 }
 0xd25   :  { %1649 = vrot.lane.b32.xlu1 %v923_v6, %s2266_s21 }
 0xd67   :  { %v1399_v33 = vpop.xlane.xlu1 %1398 }
 0xd68   :  { %2182 = vrcp.f32 %v1399_v33 }
 0xd69   :  { %2184 = vrcp.f32 %v1301_v28 }
 0xd6e   :  { %v2183_v37 = vpop.eup %2182 }
 0xd6f   :  { %v2664_v38 = vmul.f32 %v2183_v37, %v2181_v26  ;;  %v2185_v42 = vpop.eup %2184 }
 0xd70   :  { %v2670_v46 = vmul.f32 %v2185_v42, %v2179_v22 }
 0xd71   :  { %2049 = vmatmul.msk.f32.vlgmr.msrb.gmra.mxu1 %vm1000_vm6, %v2664_v38 }
 0xd72   :  { %2061 = vmatpush.xpose.msk.msrb.mxu1 %vm98_vm1, %v1654_v39 }
 0xd76   :  { %2062 = vmatpush.xpose.msk.msrb.mxu1 %vm98_vm1, %v1652_v36 }
 0xd7f   :  { %v2110_v41 = vpop.permute.xlu1 %2109 }
 0xd80   :  { %v2111_v43 = vunpack.i.l.bf16 %v2110_v41  ;;  %v2112_v44 = vunpack.i.h.bf16 %v2110_v41 }
 0xd82   :  { %1327 = vmatpush.msra.mxu3 %v2111_v43 }
 0xd84   :  { %1328 = vmatpush.msra.mxu3 %v2112_v44 }
 0xd85   :  { %2044 = vmatmul.msk.f32.vlgmr.msra.gmra.mxu3 %vm1000_vm6, %v2670_v46 }
 0xd86   :  { %2050 = vmatpush.xpose.msk.msrb.mxu3 %vm98_vm1, %v1436_v29 }
 0xd87   :  { %v1432_v47 = vpop.permute.xlu1 %1431 }
 0xd8a   :  { %2051 = vmatpush.xpose.msk.msrb.mxu3 %vm98_vm1, %v1434_v31 }
 0xd8d   :  { %2052 = vmatmul.msk.f32.vlgmr.msrb.gmra.mxu3 %vm98_vm1, %v1432_v47 }
 0xd8e   :  { %2056 = vmatpush.xpose.msk.msra.mxu3 %vm98_vm1, %v1556_v32 }
 0xd8f   :  { %v1552_v49 = vpop.permute.xlu1 %1551 }
 0xd92   :  { %2057 = vmatpush.xpose.msk.msra.mxu3 %vm98_vm1, %v1554_v34 }
 0xd95   :  { %2058 = vmatmul.msk.f32.vlgmr.msra.gmra.mxu3 %vm98_vm1, %v1552_v49 }
 0xd97   :  { %v1650_v51 = vpop.permute.xlu1 %1649 }
 0xdee   :  { %v1428_v48 = vpop.f32.mrf.mxu1 }
 0xdef   :  { %2055 = vmatmul.msk.f32.vlgmr.msra.gmra.mxu1 %vm98_vm1, %v1428_v48 }
 0xdf7   :  { %2063 = vmatmul.msk.f32.vlgmr.msrb.gmra.mxu1 %vm98_vm1, %v1650_v51 }
 0xe08   :  { %v1330_v52 = vpop.f32.mrf.mxu3 }
 0xe09   :  { %2045 = vmatmul.msk.f32.vlgmr.msrb.gmra.mxu0 %vm98_vm1, %v1330_v52 }
 0xe10   :  { %v1460_v53 = vpop.f32.mrf.mxu3 }
 0xe11   :  { %v1463_v8 = vmul.f32 0.35355338, %v1460_v53 }
 0xe13   :  { %v1464_v56 = vadd.f32 %v1463_v8, %v2650_v16 }
 0xe15   :  { %v1465_v57 = vsel %vm1000_vm6, %v1464_v56, -inf }
 0xe16   :  { %1466 = vmax.xlane.f32.xlu2 %v1465_v57 }
 0xe18   :  { %v1580_v58 = vpop.f32.mrf.mxu3 }
 0xe19   :  { %v1583_v59 = vmul.f32 0.35355338, %v1580_v58 }
 0xe1b   :  { %v1584_v60 = vadd.f32 %v1583_v59, %v2650_v16 }
 0xe1d   :  { %v1585_v63 = vsel %vm1000_vm6, %v1584_v60, -inf }
 0xe1e   :  { %1586 = vmax.xlane.f32.xlu0 %v1585_v63 }
 0xe32   :  { %2114 = vrot.lane.b32.xlu0 %v2626_v0, %s2264_s17 }
 0xe6c   :  { %v2692_v1 = vpop.f32.mrf.mxu1 }
 0xe74   :  { %v1678_v3 = vpop.f32.mrf.mxu1 }
 0xe75   :  { %v1681_v6 = vmul.f32 0.35355338, %v1678_v3  ;;  %v1837_v3 = vld [vmem:[#allocation2 + $0xb0] sm:$0xff] }
 0xe77   :  { %v1682_v61 = vadd.f32 %v1681_v6, %v2650_v16  ;;  %v1836_v6 = vld [vmem:[#allocation2 + $0xa8] sm:$0xff] }
 0xe79   :  { %v1683_v7 = vsel %vm1000_vm6, %v1682_v61, -inf }
 0xe7a   :  { %1684 = vmax.xlane.f32.xlu1 %v1683_v7  ;;  %v1835_v7 = vld [vmem:[#allocation2 + $0xa0] sm:$0xff] }
 0xe86   :  { %v1353_v54 = vpop.f32.mrf.mxu0 }
 0xe87   :  { %v1356_v25 = vadd.f32 %v1353_v54, %v1258_v4 }
 0xe89   :  { %v1358_v12 = vadd.f32 %v1357_v11, %v1356_v25  ;;  %v1467_v16 = vpop.xlane.xlu2 %1466 }
 0xe8a   :  { %v1468_v17 = vsub.f32 %v1464_v56, %v1467_v16  ;;  %v1828_v16 = vperm.slane %v2702_v10, 7 }
 0xe8b   :  { %v1782_v18 = vadd.f32 %v1358_v12, %v2487_v50 }
 0xe8c   :  { %v1469_v20 = vmul.f32 1.442695, %v1468_v17 }
 0xe8d   :  { %v1784_v2 = vsel %vm58_vm0, %v1782_v18, 0.0 }
 0xe8e   :  { %2186 = vpow2.f32 %v1469_v20  ;;  %1785 = vadd.xlane.f32.xlu0 %v1784_v2  ;;  %v2739_v20 = vld [vmem:[%s2839_s6 + $0x8] sm:$0xff] }
 0xe91   :  { %v1587_v5 = vpop.xlane.xlu0 %1586 }
 0xe92   :  { %v1588_v13 = vsub.f32 %v1584_v60, %v1587_v5  ;;  %v1838_v60 = vld [vmem:[#allocation2 + $0xb8] sm:$0xff]  ;;  %v1831_v5 = vperm.slane %v2739_v20, 0 }
 0xe94   :  { %v2187_v14 = vpop.eup %2186  ;;  %v1589_v21 = vmul.f32 1.442695, %v1588_v13 }
 0xe95   :  { %v1471_v22 = vsel %vm1000_vm6, %v2187_v14, 0.0 }
 0xe96   :  { %2188 = vpow2.f32 %v1589_v21  ;;  %1472 = vadd.xlane.f32.xlu2 %v1471_v22  ;;  %v1877_v22 = vld [vmem:[%s2838_s5 + $0x30] sm:$0xff] }
 0xe9c   :  { %v2189_v24 = vpop.eup %2188 }
 0xe9d   :  { %v1591_v23 = vsel %vm1000_vm6, %v2189_v24, 0.0 }
 0xe9e   :  { %1592 = vadd.xlane.f32.xlu1 %v1591_v23  ;;  %v1875_v23 = vld [vmem:[%s2838_s5 + $0x20] sm:$0xff] }
 0xea4   :  { %v2115_v30 = vpop.permute.xlu0 %2114 }
 0xea5   :  { %v2116_v15 = vunpack.i.l.bf16 %v2115_v30  ;;  %v2117_v50 = vunpack.i.h.bf16 %v2115_v30  ;;  %v1874_v30 = vld [vmem:[%s2838_s5 + $0x18] sm:$0xff] }
 0xea7   :  { %1499 = vmatpush.msra.mxu0 %v2116_v15  ;;  %v1873_v15 = vld [vmem:[%s2838_s5 + $0x10] sm:$0xff] }
 0xea9   :  { %1500 = vmatpush.msra.mxu0 %v2117_v50  ;;  %v1872_v50 = vld [vmem:[%s2838_s5 + $0x8] sm:$0xff] }
 0xeb7   :  { %2119 = vrot.lane.b32.xlu1 %v2626_v0, %s2271_s26 }
 0xeed   :  { %v1685_v26 = vpop.xlane.xlu1 %1684 }
 0xeee   :  { %v1686_v27 = vsub.f32 %v1682_v61, %v1685_v26  ;;  %v1871_v26 = vld [vmem:[%s2838_s5] sm:$0xff] }
 0xef0   :  { %v1687_v28 = vmul.f32 1.442695, %v1686_v27 }
 0xef2   :  { %2190 = vpow2.f32 %v1687_v28 }
 0xef8   :  { %v2191_v29 = vpop.eup %2190 }
 0xef9   :  { %v1689_v31 = vsel %vm1000_vm6, %v2191_v29, 0.0 }
 0xefa   :  { %1690 = vadd.xlane.f32.xlu2 %v1689_v31 }
 0xf01   :  { %v1786_v32 = vpop.xlane.xlu0 %1785 }
 0xf02   :  { %v1790_v33 = vmul.f32 %v1786_v32, %v2472_v19  ;;  %v1839_v32 = vperm.slane %v2739_v20, 1 }
 0xf04   :  { %v1792_v34 = vsub.f32 %v1782_v18, %v1790_v33 }
 0xf06   :  { %v1794_v37 = vmul.f32 %v1792_v34, %v1792_v34 }
 0xf08   :  { %v1796_v39 = vsel %vm58_vm0, %v1794_v37, 0.0 }
 0xf09   :  { %v1473_v36 = vpop.xlane.xlu2 %1472  ;;  %1797 = vadd.xlane.f32.xlu1 %v1796_v39 }
 0xf0a   :  { %2192 = vrcp.f32 %v1473_v36 }
 0xf10   :  { %v2193_v41 = vpop.eup %2192 }
 0xf11   :  { %v2716_v42 = vmul.f32 %v2193_v41, %v2187_v14  ;;  %v1593_v43 = vpop.xlane.xlu1 %1592  ;;  %v1878_v14 = vld [vmem:[%s2838_s5 + $0x38] sm:$0xff] }
 0xf12   :  { %2124 = vrot.lane.b32.xlu2 %v2626_v0, %s2269_s24  ;;  %2194 = vrcp.f32 %v1593_v43  ;;  %1894 = vmatpush.msra.mxu1 %v1878_v14 }
 0xf13   :  { %2053 = vmatmul.msk.f32.vlgmr.msra.gmra.mxu0 %vm1000_vm6, %v2716_v42 }
 0xf14   :  { %1895 = vmatpush.msra.mxu1 %v1877_v22 }
 0xf18   :  { %v2195_v47 = vpop.eup %2194 }
 0xf19   :  { %v2724_v51 = vmul.f32 %v2195_v47, %v2189_v24  ;;  %v1876_v24 = vld [vmem:[%s2838_s5 + $0x28] sm:$0xff]  ;;  %s2274_s5 = smov 32  }
 0xf1a   :  { %1896 = vmatpush.msra.mxu1 %v1876_v24 }
 0xf1c   :  { %1897 = vmatpush.msra.mxu1 %v1875_v23 }
 0xf1e   :  { %1898 = vmatpush.msra.mxu1 %v1874_v30 }
 0xf20   :  { %1899 = vmatpush.msra.mxu1 %v1873_v15 }
 0xf22   :  { %1754 = vrot.lane.b32.xlu1 %v2670_v46, %s2267_s22  ;;  %1900 = vmatpush.msra.mxu1 %v1872_v50 }
 0xf24   :  { %1901 = vmatpush.msra.mxu1 %v1871_v26 }
 0xf29   :  { %v2120_v44 = vpop.permute.xlu1 %2119 }
 0xf2a   :  { %v2121_v49 = vunpack.i.l.bf16 %v2120_v44  ;;  %v2122_v48 = vunpack.i.h.bf16 %v2120_v44 }
 0xf2c   :  { %1619 = vmatpush.msrb.mxu0 %v2121_v49  ;;  %v1879_v49 = vperm.slane %v2739_v20, 2 }
 0xf2e   :  { %1620 = vmatpush.msrb.mxu0 %v2122_v48 }
 0xf2f   :  { %2059 = vmatmul.msk.f32.vlgmr.msrb.gmra.mxu0 %vm1000_vm6, %v2724_v51 }
 0xf30   :  { %1741 = vmatpush.msra.mxu0 %v2680_v45 }
 0xf6d   :  { %v1691_v0 = vpop.xlane.xlu2 %1690 }
 0xf6e   :  { %2196 = vrcp.f32 %v1691_v0 }
 0xf74   :  { %v2197_v53 = vpop.eup %2196 }
 0xf75   :  { %v2125_v52 = vpop.permute.xlu2 %2124  ;;  %v2729_v56 = vmul.f32 %v2197_v53, %v2191_v29 }
 0xf76   :  { %v2126_v8 = vunpack.i.l.bf16 %v2125_v52  ;;  %v2127_v46 = vunpack.i.h.bf16 %v2125_v52 }
 0xf78   :  { %1717 = vmatpush.msrb.mxu3 %v2126_v8 }
 0xf7a   :  { %1718 = vmatpush.msrb.mxu3 %v2127_v46 }
 0xf7b   :  { %2064 = vmatmul.msk.f32.vlgmr.msrb.gmra.mxu3 %vm1000_vm6, %v2729_v56 }
 0xf7c   :  { %v1798_v57 = vpop.xlane.xlu1 %1797 }
 0xf7d   :  { %v1802_v58 = vmul.f32 %v1798_v57, %v2472_v19 }
 0xf7f   :  { %v1804_v59 = vadd.f32 1e-05, %v1802_v58 }
 0xf81   :  { %2198 = vrsqrt.f32 %v1804_v59  ;;  %vm1812_vm11 = vweird.f32 %v1804_v59 }
 0xf87   :  { %v2199_v63 = vpop.eup %2198 }
 0xf88   :  { %v1807_v61 = vmul.f32 %v2199_v63, %v1804_v59  ;;  %vm1813_vm10 = vweird.f32 %v2199_v63 }
 0xf89   :  { %vm1814_vm12 = vmor %vm1812_vm11, %vm1813_vm10  ;;  %vm1777_vm11 = vcmask 785408  }
 0xf8a   :  { %v1808_v9 = vmul.f32 %v2199_v63, %v1807_v61 }
 0xf8c   :  { %v1809_v4 = vmul.f32 0.5, %v1808_v9 }
 0xf8e   :  { %v1810_v54 = vsub.f32 1.5, %v1809_v4 }
 0xf90   :  { %v1502_v45 = vpop.f32.mrf.mxu0  ;;  %v1811_v25 = vmul.f32 %v2199_v63, %v1810_v54 }
 0xf91   :  { %2054 = vmatmul.msk.f32.vlgmr.msra.gmra.mxu2 %vm98_vm1, %v1502_v45 }
 0xf92   :  { %1858 = vmatpush.msra.mxu2 %v1838_v60  ;;  %v1815_v12 = vsel %vm1814_vm12, %v2199_v63, %v1811_v25 }
 0xf93   :  { %v1826_v17 = vmul.f32 %v1815_v12, %v1792_v34 }
 0xf94   :  { %1859 = vmatpush.msra.mxu2 %v1837_v3 }
 0xf95   :  { %v1829_v2 = vmul.f32 %v1828_v16, %v1826_v17 }
 0xf96   :  { %1860 = vmatpush.msra.mxu2 %v1836_v6 }
 0xf97   :  { %v1832_v13 = vadd.f32 %v1831_v5, %v1829_v2 }
 0xf98   :  { %1861 = vmatpush.msra.mxu2 %v1835_v7 }
 0xfac   :  { %v1622_v18 = vpop.f32.mrf.mxu0 }
 0xfad   :  { %2060 = vmatmul.msk.f32.vlgmr.msrb.gmra.mxu2 %vm98_vm1, %v1622_v18 }
 0xfb5   :  { %2066 = vmatmul.msk.f32.vlgmr.msra.gmra.mxu2 %vm58_vm0, %v1832_v13 }
 0xffe   :  { %v1720_v21 = vpop.f32.mrf.mxu3 }
 0xfff   :  { %2065 = vmatmul.msk.f32.vlgmr.msra.gmra.mxu0 %vm98_vm1, %v1720_v21 }
0x1014   :  { %v1525_v27 = vpop.f32.mrf.mxu2 }
0x1015   :  { %v1549_v28 = vadd.f32 %v2692_v1, %v1525_v27 }
0x1030   :  { %v1645_v29 = vpop.f32.mrf.mxu2 }
0x1031   :  { %v1648_v31 = vadd.f32 %v1645_v29, %v1549_v28 }
0x1038   :  { %v1863_v33 = vpop.f32.mrf.mxu2 }
0x1039   :  { %v1864_v34 = vadd.f32 %v1863_v33, %v1839_v32 }
0x103b   :  { %v1869_v37 = vmax.f32 %v1864_v34, 0.0 }
0x103d   :  { %2068 = vmatmul.msk.f32.vlgmr.msra.gmra.mxu1 %vm1773_vm13, %v1869_v37 }
0x107c   :  { %v1743_v39 = vpop.f32.mrf.mxu0 }
0x107d   :  { %v1746_v36 = vadd.f32 %v1743_v39, %v1648_v31 }
0x107f   :  { %v1747_v41 = vadd.f32 %v1746_v36, %v1357_v11 }
0x1081   :  { %v1783_v43 = vadd.f32 %v1747_v41, %v2602_v40 }
0x1083   :  { %v1787_v1 = vsel %vm58_vm0, %v1783_v43, 0.0 }
0x1084   :  { %1788 = vadd.xlane.f32.xlu2 %v1787_v1 }
0x10ba   :  { %v1903_v0 = vpop.f32.mrf.mxu1 }
0x10bb   :  { %v1904_v53 = vadd.f32 %v1903_v0, %v1879_v49 }
0x10bd   :  { %v1909_v11 = vadd.f32 %v1904_v53, %v1832_v13 }
0x10bf   :  { %v1911_v40 = vsel %vm58_vm0, %v1909_v11, 0.0 }
0x10f7   :  { %v1789_v44 = vpop.xlane.xlu2 %1788 }
0x10f8   :  { %v1791_v47 = vmul.f32 %v1789_v44, %v2472_v19 }
0x10fa   :  { %v1793_v48 = vsub.f32 %v1783_v43, %v1791_v47 }
0x10fc   :  { %v1795_v52 = vmul.f32 %v1793_v48, %v1793_v48 }
0x10fe   :  { %v1799_v8 = vsel %vm58_vm0, %v1795_v52, 0.0 }
0x10ff   :  { %1800 = vadd.xlane.f32.xlu0 %v1799_v8 }
0x1107   :  { %1912 = vadd.xlane.f32.xlu0 %v1911_v40 }
0x1172   :  { %v1801_v46 = vpop.xlane.xlu0 %1800 }
0x1173   :  { %v1803_v57 = vmul.f32 %v1801_v46, %v2472_v19 }
0x1175   :  { %v1805_v58 = vadd.f32 1e-05, %v1803_v57 }
0x1177   :  { %2200 = vrsqrt.f32 %v1805_v58  ;;  %vm1822_vm15 = vweird.f32 %v1805_v58 }
0x117a   :  { %v1913_v59 = vpop.xlane.xlu0 %1912 }
0x117b   :  { %v1917_v60 = vmul.f32 %v1913_v59, %v2472_v19 }
0x117d   :  { %v2201_v45 = vpop.eup %2200  ;;  %v1919_v63 = vsub.f32 %v1909_v11, %v1917_v60 }
0x117e   :  { %v1817_v3 = vmul.f32 %v2201_v45, %v1805_v58  ;;  %vm1823_vm14 = vweird.f32 %v2201_v45 }
0x117f   :  { %v1921_v6 = vmul.f32 %v1919_v63, %v1919_v63  ;;  %vm1824_vm1 = vmor %vm1822_vm15, %vm1823_vm14 }
0x1180   :  { %v1818_v61 = vmul.f32 %v2201_v45, %v1817_v3 }
0x1181   :  { %v1923_v7 = vsel %vm58_vm0, %v1921_v6, 0.0 }
0x1182   :  { %v1819_v9 = vmul.f32 0.5, %v1818_v61  ;;  %1924 = vadd.xlane.f32.xlu0 %v1923_v7 }
0x1184   :  { %v1820_v4 = vsub.f32 1.5, %v1819_v9 }
0x1186   :  { %v1821_v54 = vmul.f32 %v2201_v45, %v1820_v4 }
0x1188   :  { %v1825_v25 = vsel %vm1824_vm1, %v2201_v45, %v1821_v54 }
0x1189   :  { %v1827_v12 = vmul.f32 %v1825_v25, %v1793_v48 }
0x118b   :  { %v1830_v17 = vmul.f32 %v1828_v16, %v1827_v12 }
0x118d   :  { %v1833_v18 = vadd.f32 %v1831_v5, %v1830_v17 }
0x118f   :  { %2067 = vmatmul.msk.f32.gmra.mxu2 %vm58_vm0, %v1833_v18 }
0x1196   :  { %1751 = vrot.lane.b32.xlu0 %v2618_v55, %s2274_s5  ;;  %v1955_v55 = vperm.slane %v2739_v20, 3 }
0x119e   :  { %1757 = vrot.lane.b32.xlu0 %v2664_v38, %s2268_s23 }
0x11a6   :  { %1766 = vrot.lane.b32.xlu0 %v2729_v56, %s2265_s20  ;;  %v1958_v56 = vperm.slane %v2739_v20, 4  ;;  %s2275_s20 = smov 16   ;;  %v1755_v20 = vpop.permute.xlu1 %1754 }
0x11f5   :  { %v1925_v2 = vpop.xlane.xlu0 %1924 }
0x11f6   :  { %v1929_v13 = vmul.f32 %v1925_v2, %v2472_v19 }
0x11f8   :  { %v1931_v14 = vadd.f32 1e-05, %v1929_v13 }
0x11fa   :  { %2202 = vrsqrt.f32 %v1931_v14  ;;  %vm1939_vm3 = vweird.f32 %v1931_v14 }
0x1200   :  { %v2203_v10 = vpop.eup %2202 }
0x1201   :  { %v1934_v16 = vmul.f32 %v2203_v10, %v1931_v14  ;;  %vm1940_vm2 = vweird.f32 %v2203_v10 }
0x1202   :  { %vm1941_vm4 = vmor %vm1939_vm3, %vm1940_vm2 }
0x1203   :  { %v1935_v21 = vmul.f32 %v2203_v10, %v1934_v16 }
0x1205   :  { %v1936_v5 = vmul.f32 0.5, %v1935_v21 }
0x1207   :  { %v1937_v22 = vsub.f32 1.5, %v1936_v5 }
0x1209   :  { %v1938_v24 = vmul.f32 %v2203_v10, %v1937_v22 }
0x120b   :  { %v1942_v38 = vsel %vm1941_vm4, %v2203_v10, %v1938_v24 }
0x120c   :  { %v1953_v23 = vmul.f32 %v1942_v38, %v1919_v63 }
0x120e   :  { %v1956_v30 = vmul.f32 %v1955_v55, %v1953_v23 }
0x1210   :  { %v1959_v15 = vadd.f32 %v1958_v56, %v1956_v30 }
0x1212   :  { %v1866_v50 = vpop.f32.mrf.mxu2  ;;  %1961 = vst.msk [vmem:[#allocation5] sm:$0xff] %vm58_vm0, %v1959_v15 }
0x1213   :  { %v1867_v26 = vadd.f32 %v1866_v50, %v1839_v32 }
0x1215   :  { %v1870_v27 = vmax.f32 %v1867_v26, 0.0 }
0x1217   :  { %2069 = vmatmul.msk.f32.gmra.mxu1 %vm1773_vm13, %v1870_v27 }
0x1294   :  { %v1906_v28 = vpop.f32.mrf.mxu1 }
0x1295   :  { %v1907_v29 = vadd.f32 %v1906_v28, %v1879_v49 }
0x1297   :  { %v1910_v31 = vadd.f32 %v1907_v29, %v1833_v18 }
0x1299   :  { %v1914_v33 = vsel %vm58_vm0, %v1910_v31, 0.0 }
0x129a   :  { %1915 = vadd.xlane.f32.xlu2 %v1914_v33 }
0x12b2   :  { %1748 = vrot.lane.b32.xlu2 %v2572_v35, %s2275_s20  ;;  %v1752_v35 = vpop.permute.xlu0 %1751 }
0x12ba   :  { %1760 = vrot.lane.b32.xlu2 %v2716_v42, %s2271_s26  ;;  %v1758_v0 = vpop.permute.xlu0 %1757 }
0x12c2   :  { %v1767_v59 = vpop.permute.xlu0 %1766 }
0x130d   :  { %v1916_v34 = vpop.xlane.xlu2 %1915 }
0x130e   :  { %v1918_v32 = vmul.f32 %v1916_v34, %v2472_v19 }
0x1310   :  { %v1920_v37 = vsub.f32 %v1910_v31, %v1918_v32 }
0x1312   :  { %v1922_v39 = vmul.f32 %v1920_v37, %v1920_v37 }
0x1314   :  { %v1926_v36 = vsel %vm58_vm0, %v1922_v39, 0.0 }
0x1315   :  { %1927 = vadd.xlane.f32.xlu1 %v1926_v36  ;;  %v1749_v42 = vpop.permute.xlu2 %1748 }
0x1316   :  { %v1769_v49 = vsel %vm1000_vm6, %v2568_v62, %v1749_v42  ;;  %vm1779_vm6 = vcmask 916480  }
0x1317   :  { %v1770_v53 = vsel %vm58_vm0, %v1769_v49, %v1752_v35 }
0x1318   :  { %v1772_v8 = vsel %vm1771_vm5, %v1770_v53, %v1755_v20 }
0x1319   :  { %v1774_v46 = vsel %vm1773_vm13, %v1772_v8, %v1758_v0 }
0x132e   :  { %1763 = vrot.lane.b32.xlu1 %v2724_v51, %s2263_s16  ;;  %s2276_s16 = smov [#allocation5]  }
0x132f   :  { %s1967_s23 = sshll.u32 %s2276_s16, 4  ;;  %s1968_s23 = int_to_ptr.vmem [resolvable:$true] %s1967_s23 }
0x1388   :  { %v1928_v41 = vpop.xlane.xlu1 %1927 }
0x1389   :  { %v1930_v43 = vmul.f32 %v1928_v41, %v2472_v19  ;;  %v1761_v19 = vpop.permute.xlu2 %1760 }
0x138a   :  { %v1776_v62 = vsel %vm1775_vm9, %v1774_v46, %v1761_v19 }
0x138b   :  { %v1932_v1 = vadd.f32 1e-05, %v1930_v43 }
0x138d   :  { %2204 = vrsqrt.f32 %v1932_v1  ;;  %vm1949_vm8 = vweird.f32 %v1932_v1 }
0x1393   :  { %v2205_v44 = vpop.eup %2204 }
0x1394   :  { %v1944_v47 = vmul.f32 %v2205_v44, %v1932_v1  ;;  %vm1950_vm7 = vweird.f32 %v2205_v44 }
0x1395   :  { %vm1951_vm10 = vmor %vm1949_vm8, %vm1950_vm7 }
0x1396   :  { %v1945_v48 = vmul.f32 %v2205_v44, %v1944_v47 }
0x1398   :  { %v1946_v52 = vmul.f32 0.5, %v1945_v48 }
0x139a   :  { %v1947_v51 = vsub.f32 1.5, %v1946_v52 }
0x139c   :  { %v1948_v11 = vmul.f32 %v2205_v44, %v1947_v51 }
0x139e   :  { %v1952_v40 = vsel %vm1951_vm10, %v2205_v44, %v1948_v11 }
0x139f   :  { %v1954_v57 = vmul.f32 %v1952_v40, %v1920_v37 }
0x13a0   :  { %v1764_v58 = vpop.permute.xlu1 %1763 }
0x13a1   :  { %v1957_v60 = vmul.f32 %v1955_v55, %v1954_v57  ;;  %v1778_v45 = vsel %vm1777_vm11, %v1776_v62, %v1764_v58 }
0x13a2   :  { %v1780_v63 = vsel %vm1779_vm6, %v1778_v45, %v1767_v59 }
0x13a3   :  { %1781 = vst [vmem:[%s2841_s8] sm:$0xff] %v1780_v63  ;;  %v1960_v3 = vadd.f32 %v1958_v56, %v1957_v60 }
0x13a5   :  { %1962 = vst.msk [vmem:[#allocation5 + $0x8] sm:$0xff] %vm58_vm0, %v1960_v3 }
0x13a6   :  { %1975 = dma.vmem_to_hbm [thread:$0]  %s1968_s23, 256, %s1970_s25, [#allocation4], %s2260_s10, %s2260_s10, %s2261_s11  }
0x13a7   :  { %2257 = dma.done.wait [#allocation4], 256  }
0x13a8   :  { %2258 = vsyncadd [#allocation4], 4294967040 }
0x13a9   :  { %1984 = vsyncpa [#allocation3], 1 }
0x13aa   :  { %1985 = vsyncpa [#allocation4], 1 }

</bundles_post_ra>
